<compile_context>
chip_gen: v5e
topology: v5e:2x2
jax: 0.10.0
libtpu: 0.0.40
codegen_flags: <defaults>
</compile_context>

<pallas_src>
import functools

import jax
import jax.numpy as jnp
from jax.experimental import pallas as pl
from jax.experimental.pallas import tpu as pltpu


_VMEM = pl.BlockSpec(memory_space=pltpu.MemorySpace.VMEM)


# ---------------------------------------------------------------------------
# Fused kernel: [GraphSage x num_layers] -> relu -> post_mp -> log_softmax
# ---------------------------------------------------------------------------
def _gnn_stack_kernel(*refs, num_layers, hidden_p, out_dim, tile_m):
    x_ref, a_hbm = refs[0], refs[1]
    conv_refs = refs[2:2 + 2 * num_layers]
    w1_ref, b1_ref, w2_ref, b2_ref = refs[2 + 2 * num_layers:6 + 2 * num_layers]
    o_ref = refs[6 + 2 * num_layers]
    a_buf, a_sem, msg_buf, self_buf, h_buf = refs[7 + 2 * num_layers:]

    n_pad = a_hbm.shape[0]
    n_tiles = n_pad // tile_m

    def a_copy(row_start, slot):
        # (tile_m, n_pad) bf16 row-slab of the mean-aggregation operator.
        return pltpu.make_async_copy(
            a_hbm.at[pl.ds(row_start, tile_m), :], a_buf.at[slot],
            a_sem.at[slot])

    for layer in range(num_layers):
        if layer == 0:
            h = x_ref[...]                       # f32 (n_pad, fp)
        else:
            # F.relu between GNNStack layers (dropout p=0 -> identity).
            h = jnp.maximum(h_buf[...], 0.0)     # f32 (n_pad, hp)

        # Prefetch the first A row-tile; DMA overlaps the projection matmul.
        a_copy(0, 0).start()

        # Fused projections: h @ [Wagg | Wlin] -> 256-lane RHS fills the MXU.
        wcat = conv_refs[2 * layer + 0][...]     # bf16 (din_p, 2*hp)
        bcat = conv_refs[2 * layer + 1][...]     # f32  (1, 2*hp)
        hcat = jnp.dot(h.astype(jnp.bfloat16), wcat,
                       preferred_element_type=jnp.float32) + bcat
        # msg = relu(agg_lin(h))  (bf16, stays fully VMEM-resident)
        msg_buf[...] = jnp.maximum(hcat[:, :hidden_p], 0.0).astype(jnp.bfloat16)
        # self path = lin(h) (pre-relu), f32
        self_buf[...] = hcat[:, hidden_p:2 * hidden_p]

        # Row-tiled mean aggregation, A streamed via a 2-deep DMA pipeline.
        @pl.loop(0, n_tiles)
        def _(t):
            slot = t & 1
            row0 = pl.multiple_of(t * tile_m, tile_m)
            a_copy(row0, slot).wait()

            @pl.when(t + 1 < n_tiles)
            def _():
                nxt = pl.multiple_of((t + 1) * tile_m, tile_m)
                a_copy(nxt, 1 - slot).start()

            # bf16 x bf16 -> f32 accumulate on the MXU.
            agg = jnp.dot(a_buf[slot], msg_buf[...],
                          preferred_element_type=jnp.float32)
            z = jnp.maximum(agg + self_buf[pl.ds(row0, tile_m), :], 0.0)
            # L2 normalize (rsqrt -> EUP slot), == F.normalize(p=2, dim=-1).
            sumsq = jnp.sum(z * z, axis=-1, keepdims=True)
            h_buf[pl.ds(row0, tile_m), :] = (
                z * jax.lax.rsqrt(jnp.maximum(sumsq, 1e-24)))

    # relu -> Linear -> (Dropout p=0) -> Linear, all matmuls bf16 on the MXU.
    h = jnp.maximum(h_buf[...], 0.0)
    p1 = jnp.dot(h.astype(jnp.bfloat16), w1_ref[...],
                 preferred_element_type=jnp.float32) + b1_ref[...]
    logits = (jnp.dot(p1.astype(jnp.bfloat16), w2_ref[...],
                      preferred_element_type=jnp.float32) + b2_ref[...])

    # Mask zero-padded output lanes so they do not leak into log_softmax.
    lane = jax.lax.broadcasted_iota(jnp.int32, logits.shape, 1)
    logits = jnp.where(lane < out_dim, logits, jnp.full_like(logits, -1e30))

    m = jnp.max(logits, axis=-1, keepdims=True)
    zc = logits - m
    lse = jnp.log(jnp.sum(jnp.exp(zc), axis=-1, keepdims=True))
    o_ref[...] = zc - lse


# ---------------------------------------------------------------------------
# Wrapper: lane/sublane padding, dense mean operator, single fused call
# ---------------------------------------------------------------------------
def _round_up(v, m):
    return ((v + m - 1) // m) * m


def _pad2(w, r, c):
    return jnp.zeros((r, c), jnp.float32).at[:w.shape[0], :w.shape[1]].set(w)


def _vmem_limit_bytes():
    # Generation-aware scoped-VMEM limit: ~75% of physical per-core VMEM
    # (~48 MiB on v7x's 64 MiB, ~96 MiB on v5e/v6e's 128 MiB).
    try:
        cap = pltpu.get_tpu_info().vmem_capacity_bytes
        return int(max(32 << 20, (cap * 3) // 4))
    except Exception:
        return 48 << 20   # safe on every generation


def gnn_stack_forward(x, edge_index, conv_params, mp_params, output_dim,
                      tile_m=128):
    """GNNStack.forward (GraphSage, task='node', eval / dropout=0)."""
    assert tile_m % 128 == 0
    n, f = x.shape
    hidden = conv_params[0][0].shape[1]
    num_layers = len(conv_params)

    np_ = _round_up(n, tile_m)       # rows of A / nodes (multiple of 128)
    fp = _round_up(f, 128)
    hp = _round_up(hidden, 128)
    op = _round_up(output_dim, 128)  # lane-dense output store

    # Node features, zero padded (padded nodes have no edges -> no leakage).
    xp = jnp.zeros((np_, fp), jnp.float32).at[:n, :f].set(x)

    # Dense mean-aggregation operator: A[t, s] = count(s->t) / in_deg(t), bf16.
    src, dst = edge_index[0], edge_index[1]   # PyG: [0]=source j, [1]=target i
    adj = jnp.zeros((np_, np_), jnp.float32).at[dst, src].add(1.0)
    deg = jnp.sum(adj, axis=1, keepdims=True)
    a_mean = (adj / jnp.maximum(deg, 1.0)).astype(jnp.bfloat16)

    args = [xp, a_mean]
    in_dims = [fp] + [hp] * (num_layers - 1)
    for (wagg, bagg, wlin, blin), dinp in zip(conv_params, in_dims):
        # Pack [Wagg | Wlin] -> one (din_p, 2*hp) bf16 RHS; biases stay f32.
        wcat = jnp.zeros((dinp, 2 * hp), jnp.float32)
        wcat = wcat.at[:wagg.shape[0], :wagg.shape[1]].set(wagg)
        wcat = wcat.at[:wlin.shape[0], hp:hp + wlin.shape[1]].set(wlin)
        bcat = jnp.zeros((1, 2 * hp), jnp.float32)
        bcat = bcat.at[:, :bagg.shape[1]].set(bagg)
        bcat = bcat.at[:, hp:hp + blin.shape[1]].set(blin)
        args += [wcat.astype(jnp.bfloat16), bcat]
    w1, b1, w2, b2 = mp_params
    args += [_pad2(w1, hp, hp).astype(jnp.bfloat16), _pad2(b1, 1, hp),
             _pad2(w2, hp, op).astype(jnp.bfloat16), _pad2(b2, 1, op)]

    in_specs = ([_VMEM,                                   # x
                 pl.BlockSpec(memory_space=pl.ANY)]       # A stays in HBM
                + [_VMEM] * (len(args) - 2))              # weights / biases

    scratch_shapes = [
        pltpu.VMEM((2, tile_m, np_), jnp.bfloat16),  # A row-tile double buffer
        pltpu.SemaphoreType.DMA((2,)),               # DMA sems (one per slot)
        pltpu.VMEM((np_, hp), jnp.bfloat16),         # msg (fully resident)
        pltpu.VMEM((np_, hp), jnp.float32),          # self path
        pltpu.VMEM((np_, hp), jnp.float32),          # h carried across layers
    ]

    out_padded = pl.pallas_call(
        functools.partial(_gnn_stack_kernel, num_layers=num_layers,
                          hidden_p=hp, out_dim=output_dim, tile_m=tile_m),
        out_shape=jax.ShapeDtypeStruct((np_, op), jnp.float32),
        in_specs=in_specs,
        out_specs=_VMEM,
        scratch_shapes=scratch_shapes,
        compiler_params=pltpu.CompilerParams(
            vmem_limit_bytes=_vmem_limit_bytes()),
    )(*args)
    return out_padded[:n, :output_dim]


# ---------------------------------------------------------------------------
# Pure-JAX reference (f32, unpadded) for a correctness sanity check
# ---------------------------------------------------------------------------
def _reference_forward(x, edge_index, conv_params, mp_params):
    n = x.shape[0]
    src, dst = edge_index[0], edge_index[1]
    adj = jnp.zeros((n, n), jnp.float32).at[dst, src].add(1.0)
    deg = jnp.sum(adj, axis=1, keepdims=True)
    a = adj / jnp.maximum(deg, 1.0)
    h = x
    for li, (wagg, bagg, wlin, blin) in enumerate(conv_params):
        if li > 0:
            h = jnp.maximum(h, 0.0)
        msg = jnp.maximum(h @ wagg + bagg, 0.0)
        z = jnp.maximum(a @ msg + h @ wlin + blin, 0.0)
        nrm = jnp.sqrt(jnp.sum(z * z, axis=-1, keepdims=True))
        h = z / jnp.maximum(nrm, 1e-12)
    h = jnp.maximum(h, 0.0)
    w1, b1, w2, b2 = mp_params
    logits = (h @ w1 + b1) @ w2 + b2
    return jax.nn.log_softmax(logits, axis=-1)


# ---------------------------------------------------------------------------
# Deterministic example run
# ---------------------------------------------------------------------------
def _xavier(key, shape):
    fan_in, fan_out = shape
    lim = (6.0 / (fan_in + fan_out)) ** 0.5
    return jax.random.uniform(key, shape, jnp.float32, -lim, lim)


if __name__ == "__main__":
    N, E = 16, 48
    input_dim, hidden_dim, output_dim = 8, 32, 4
    num_layers = 2

    key = jax.random.PRNGKey(0)
    keys = jax.random.split(key, 12)

    x = jax.random.normal(keys[0], (N, input_dim), jnp.float32)
    src = jax.random.randint(keys[1], (E,), 0, N, dtype=jnp.int32)
    dst = jax.random.randint(keys[2], (E,), 0, N, dtype=jnp.int32)
    edge_index = jnp.stack([src, dst], axis=0)  # [2, E]

    # convs[0]: GraphSage(input_dim -> hidden), convs[1]: GraphSage(hidden -> hidden)
    conv_params = []
    layer_dims = [(input_dim, hidden_dim)] + \
                 [(hidden_dim, hidden_dim)] * (num_layers - 1)
    k = 3
    for (din, dout) in layer_dims:
        w_agg = _xavier(keys[k], (din, dout)); k += 1
        w_lin = _xavier(keys[k], (din, dout)); k += 1
        b_agg = jnp.zeros((1, dout), jnp.float32)
        b_lin = jnp.zeros((1, dout), jnp.float32)
        conv_params.append((w_agg, b_agg, w_lin, b_lin))

    # post_mp: Linear(hidden, hidden) -> Dropout -> Linear(hidden, output)
    w1 = _xavier(keys[k], (hidden_dim, hidden_dim)); k += 1
    b1 = jnp.zeros((1, hidden_dim), jnp.float32)
    w2 = _xavier(keys[k], (hidden_dim, output_dim)); k += 1
    b2 = jnp.zeros((1, output_dim), jnp.float32)
    mp_params = (w1, b1, w2, b2)

    out = gnn_stack_forward(x, edge_index, conv_params, mp_params, output_dim)
    jax.block_until_ready(out)
    assert out.shape == (N, output_dim)

    ref = _reference_forward(x, edge_index, conv_params, mp_params)
    # bf16 weights / bf16 A / EUP rsqrt -> small tolerance vs the f32 reference.
    assert jnp.allclose(out, ref, atol=5e-2, rtol=5e-2)

    print("KERNEL_OK")
</pallas_src>

<mosaic_0001>
module attributes {stable_mosaic.version = 11 : i64} {
  func.func @_gnn_stack_kernel(%arg0: memref<128x128xf32, #tpu.memory_space<vmem>>, %arg1: memref<128x128xbf16, #tpu.memory_space<any>>, %arg2: memref<128x256xbf16, #tpu.memory_space<vmem>>, %arg3: memref<1x256xf32, #tpu.memory_space<vmem>>, %arg4: memref<128x256xbf16, #tpu.memory_space<vmem>>, %arg5: memref<1x256xf32, #tpu.memory_space<vmem>>, %arg6: memref<128x128xbf16, #tpu.memory_space<vmem>>, %arg7: memref<1x128xf32, #tpu.memory_space<vmem>>, %arg8: memref<128x128xbf16, #tpu.memory_space<vmem>>, %arg9: memref<1x128xf32, #tpu.memory_space<vmem>>, %arg10: memref<128x128xf32, #tpu.memory_space<vmem>>, %arg11: memref<2x128x128xbf16, #tpu.memory_space<vmem>>, %arg12: memref<2x!tpu.dma_semaphore, #tpu.memory_space<semaphore_mem>>, %arg13: memref<128x128xbf16, #tpu.memory_space<vmem>>, %arg14: memref<128x128xf32, #tpu.memory_space<vmem>>, %arg15: memref<128x128xf32, #tpu.memory_space<vmem>>) attributes {dimension_semantics = [], scalar_prefetch = 0 : i64, scratch_operands = 5 : i64, tpu.core_type = #tpu.core_type<tc>} {
    %c0 = arith.constant 0 : index
    %c0_0 = arith.constant 0 : index
    %0 = vector.load %arg0[%c0, %c0_0] : memref<128x128xf32, #tpu.memory_space<vmem>>, vector<128x128xf32>
    %c0_i32 = arith.constant 0 : i32
    %c0_i32_1 = arith.constant 0 : i32
    %c0_i32_2 = arith.constant 0 : i32
    %c0_i32_3 = arith.constant 0 : i32
    %1 = tpu.memref_slice %arg1[%c0_i32_2, %c0_i32_3] : memref<128x128xbf16, #tpu.memory_space<any>> -> memref<128x128xbf16, #tpu.memory_space<any>>
    %c0_i32_4 = arith.constant 0 : i32
    %c0_i32_5 = arith.constant 0 : i32
    %2 = tpu.memref_slice %arg11[%c0_i32, %c0_i32_4, %c0_i32_5] : memref<2x128x128xbf16, #tpu.memory_space<vmem>> -> memref<1x128x128xbf16, #tpu.memory_space<vmem>>
    %3 = tpu.memref_squeeze %2 : memref<1x128x128xbf16, #tpu.memory_space<vmem>> -> memref<128x128xbf16, #tpu.memory_space<vmem>>
    %4 = tpu.memref_slice %arg12[%c0_i32_1] : memref<2x!tpu.dma_semaphore, #tpu.memory_space<semaphore_mem>> -> memref<1x!tpu.dma_semaphore, #tpu.memory_space<semaphore_mem>>
    %5 = tpu.memref_squeeze %4 : memref<1x!tpu.dma_semaphore, #tpu.memory_space<semaphore_mem>> -> memref<!tpu.dma_semaphore, #tpu.memory_space<semaphore_mem>>
    tpu.enqueue_dma source(%1 : memref<128x128xbf16, #tpu.memory_space<any>>) target(%3 : memref<128x128xbf16, #tpu.memory_space<vmem>>) target_semaphore(%5 : memref<!tpu.dma_semaphore, #tpu.memory_space<semaphore_mem>>)
    %c0_6 = arith.constant 0 : index
    %c0_7 = arith.constant 0 : index
    %6 = vector.load %arg2[%c0_6, %c0_7] : memref<128x256xbf16, #tpu.memory_space<vmem>>, vector<128x256xbf16>
    %c0_8 = arith.constant 0 : index
    %c0_9 = arith.constant 0 : index
    %7 = vector.load %arg3[%c0_8, %c0_9] : memref<1x256xf32, #tpu.memory_space<vmem>>, vector<1x256xf32>
    %8 = arith.truncf %0 : vector<128x128xf32> to vector<128x128xbf16>
    %cst = arith.constant dense<0.000000e+00> : vector<128x256xf32>
    %9 = tpu.matmul %8, %6, %cst {dimension_numbers = #tpu.dot_dimension_numbers<[1], [0], [0], [1], [0, 0, 1, 1], [], []>} : vector<128x128xbf16>, vector<128x256xbf16>, vector<128x256xf32> -> vector<128x256xf32>
    %10 = vector.broadcast %7 : vector<1x256xf32> to vector<128x256xf32>
    %11 = arith.addf %9, %10 : vector<128x256xf32>
    %12 = vector.extract_strided_slice %11 {offsets = [0, 0], sizes = [128, 128], strides = [1, 1]} : vector<128x256xf32> to vector<128x128xf32>
    %cst_10 = arith.constant 0.000000e+00 : f32
    %13 = vector.broadcast %cst_10 : f32 to vector<128x128xf32>
    %14 = arith.maximumf %12, %13 : vector<128x128xf32>
    %15 = arith.truncf %14 : vector<128x128xf32> to vector<128x128xbf16>
    %c0_11 = arith.constant 0 : index
    %c0_12 = arith.constant 0 : index
    %16 = vector.load %arg13[%c0_11, %c0_12] : memref<128x128xbf16, #tpu.memory_space<vmem>>, vector<128x128xbf16>
    tpu.vector_store %arg13[%c0_11, %c0_12], %15 {strides = array<i32>} : memref<128x128xbf16, #tpu.memory_space<vmem>>, vector<128x128xbf16>,
    %17 = vector.extract_strided_slice %11 {offsets = [0, 128], sizes = [128, 128], strides = [1, 1]} : vector<128x256xf32> to vector<128x128xf32>
    %c0_13 = arith.constant 0 : index
    %c0_14 = arith.constant 0 : index
    %18 = vector.load %arg14[%c0_13, %c0_14] : memref<128x128xf32, #tpu.memory_space<vmem>>, vector<128x128xf32>
    tpu.vector_store %arg14[%c0_13, %c0_14], %17 {strides = array<i32>} : memref<128x128xf32, #tpu.memory_space<vmem>>, vector<128x128xf32>,
    %c0_i32_15 = arith.constant 0 : i32
    %c1_i32 = arith.constant 1 : i32
    %19 = arith.muli %c0_i32_15, %c1_i32 : i32
    %c0_i32_16 = arith.constant 0 : i32
    %20 = arith.addi %c0_i32_16, %19 : i32
    %c1_i32_17 = arith.constant 1 : i32
    %21 = arith.andi %20, %c1_i32_17 : i32
    %c128_i32 = arith.constant 128 : i32
    %22 = arith.muli %20, %c128_i32 : i32
    %23 = tpu.assume_multiple %22, 128 : i32
    %c0_i32_18 = arith.constant 0 : i32
    %24 = tpu.memref_slice %arg1[%23, %c0_i32_18] : memref<128x128xbf16, #tpu.memory_space<any>> -> memref<128x128xbf16, #tpu.memory_space<any>>
    %c0_i32_19 = arith.constant 0 : i32
    %c0_i32_20 = arith.constant 0 : i32
    %25 = tpu.memref_slice %arg11[%21, %c0_i32_19, %c0_i32_20] : memref<2x128x128xbf16, #tpu.memory_space<vmem>> -> memref<1x128x128xbf16, #tpu.memory_space<vmem>>
    %26 = tpu.memref_squeeze %25 : memref<1x128x128xbf16, #tpu.memory_space<vmem>> -> memref<128x128xbf16, #tpu.memory_space<vmem>>
    %27 = tpu.memref_slice %arg12[%21] : memref<2x!tpu.dma_semaphore, #tpu.memory_space<semaphore_mem>> -> memref<1x!tpu.dma_semaphore, #tpu.memory_space<semaphore_mem>>
    %28 = tpu.memref_squeeze %27 : memref<1x!tpu.dma_semaphore, #tpu.memory_space<semaphore_mem>> -> memref<!tpu.dma_semaphore, #tpu.memory_space<semaphore_mem>>
    tpu.wait_dma2 semaphore(%28 : memref<!tpu.dma_semaphore, #tpu.memory_space<semaphore_mem>>) src(%24 : memref<128x128xbf16, #tpu.memory_space<any>>) dst(%26 : memref<128x128xbf16, #tpu.memory_space<vmem>>)
    %c1_i32_21 = arith.constant 1 : i32
    %29 = arith.addi %20, %c1_i32_21 : i32
    %c1_i32_22 = arith.constant 1 : i32
    %30 = arith.cmpi slt, %29, %c1_i32_22 : i32
    %31 = arith.extui %30 : i1 to i32
    %c0_i32_23 = arith.constant 0 : i32
    %32 = arith.cmpi ne, %31, %c0_i32_23 : i32
    scf.if %32 {
      %c1_i32_94 = arith.constant 1 : i32
      %139 = arith.addi %20, %c1_i32_94 : i32
      %c128_i32_95 = arith.constant 128 : i32
      %140 = arith.muli %139, %c128_i32_95 : i32
      %141 = tpu.assume_multiple %140, 128 : i32
      %c1_i32_96 = arith.constant 1 : i32
      %142 = arith.subi %c1_i32_96, %21 : i32
      %c0_i32_97 = arith.constant 0 : i32
      %143 = tpu.memref_slice %arg1[%141, %c0_i32_97] : memref<128x128xbf16, #tpu.memory_space<any>> -> memref<128x128xbf16, #tpu.memory_space<any>>
      %c0_i32_98 = arith.constant 0 : i32
      %c0_i32_99 = arith.constant 0 : i32
      %144 = tpu.memref_slice %arg11[%142, %c0_i32_98, %c0_i32_99] : memref<2x128x128xbf16, #tpu.memory_space<vmem>> -> memref<1x128x128xbf16, #tpu.memory_space<vmem>>
      %145 = tpu.memref_squeeze %144 : memref<1x128x128xbf16, #tpu.memory_space<vmem>> -> memref<128x128xbf16, #tpu.memory_space<vmem>>
      %146 = tpu.memref_slice %arg12[%142] : memref<2x!tpu.dma_semaphore, #tpu.memory_space<semaphore_mem>> -> memref<1x!tpu.dma_semaphore, #tpu.memory_space<semaphore_mem>>
      %147 = tpu.memref_squeeze %146 : memref<1x!tpu.dma_semaphore, #tpu.memory_space<semaphore_mem>> -> memref<!tpu.dma_semaphore, #tpu.memory_space<semaphore_mem>>
      tpu.enqueue_dma source(%143 : memref<128x128xbf16, #tpu.memory_space<any>>) target(%145 : memref<128x128xbf16, #tpu.memory_space<vmem>>) target_semaphore(%147 : memref<!tpu.dma_semaphore, #tpu.memory_space<semaphore_mem>>)
    } else {
    }
    %33 = arith.index_cast %21 : i32 to index
    %c0_24 = arith.constant 0 : index
    %c0_25 = arith.constant 0 : index
    %34 = vector.load %arg11[%33, %c0_24, %c0_25] : memref<2x128x128xbf16, #tpu.memory_space<vmem>>, vector<1x128x128xbf16>
    %35 = vector.shape_cast %34 : vector<1x128x128xbf16> to vector<128x128xbf16>
    %c0_26 = arith.constant 0 : index
    %c0_27 = arith.constant 0 : index
    %36 = vector.load %arg13[%c0_26, %c0_27] : memref<128x128xbf16, #tpu.memory_space<vmem>>, vector<128x128xbf16>
    %cst_28 = arith.constant dense<0.000000e+00> : vector<128x128xf32>
    %37 = tpu.matmul %35, %36, %cst_28 {dimension_numbers = #tpu.dot_dimension_numbers<[1], [0], [0], [1], [0, 0, 1, 1], [], []>} : vector<128x128xbf16>, vector<128x128xbf16>, vector<128x128xf32> -> vector<128x128xf32>
    %38 = arith.index_cast %23 : i32 to index
    %c0_29 = arith.constant 0 : index
    %39 = vector.load %arg14[%38, %c0_29] : memref<128x128xf32, #tpu.memory_space<vmem>>, vector<128x128xf32>
    %40 = arith.addf %37, %39 : vector<128x128xf32>
    %cst_30 = arith.constant 0.000000e+00 : f32
    %41 = vector.broadcast %cst_30 : f32 to vector<128x128xf32>
    %42 = arith.maximumf %40, %41 : vector<128x128xf32>
    %43 = arith.mulf %42, %42 : vector<128x128xf32>
    %cst_31 = arith.constant dense<0.000000e+00> : vector<128xf32>
    %44 = vector.multi_reduction <add>, %43, %cst_31 [1] : vector<128x128xf32> to vector<128xf32>
    %45 = vector.shape_cast %44 : vector<128xf32> to vector<128x1xf32>
    %cst_32 = arith.constant 1.000000e-24 : f32
    %46 = vector.broadcast %cst_32 : f32 to vector<128x1xf32>
    %47 = arith.maximumf %45, %46 : vector<128x1xf32>
    %48 = math.rsqrt %47 : vector<128x1xf32>
    %49 = vector.broadcast %48 : vector<128x1xf32> to vector<128x128xf32>
    %50 = arith.mulf %42, %49 : vector<128x128xf32>
    %51 = arith.index_cast %23 : i32 to index
    %c0_33 = arith.constant 0 : index
    %52 = vector.load %arg15[%51, %c0_33] : memref<128x128xf32, #tpu.memory_space<vmem>>, vector<128x128xf32>
    tpu.vector_store %arg15[%51, %c0_33], %50 {strides = array<i32>} : memref<128x128xf32, #tpu.memory_space<vmem>>, vector<128x128xf32>,
    %c1_i32_34 = arith.constant 1 : i32
    %c0_35 = arith.constant 0 : index
    %c0_36 = arith.constant 0 : index
    %53 = vector.load %arg15[%c0_35, %c0_36] : memref<128x128xf32, #tpu.memory_space<vmem>>, vector<128x128xf32>
    %cst_37 = arith.constant 0.000000e+00 : f32
    %54 = vector.broadcast %cst_37 : f32 to vector<128x128xf32>
    %55 = arith.maximumf %53, %54 : vector<128x128xf32>
    %c0_i32_38 = arith.constant 0 : i32
    %c0_i32_39 = arith.constant 0 : i32
    %c0_i32_40 = arith.constant 0 : i32
    %c0_i32_41 = arith.constant 0 : i32
    %56 = tpu.memref_slice %arg1[%c0_i32_40, %c0_i32_41] : memref<128x128xbf16, #tpu.memory_space<any>> -> memref<128x128xbf16, #tpu.memory_space<any>>
    %c0_i32_42 = arith.constant 0 : i32
    %c0_i32_43 = arith.constant 0 : i32
    %57 = tpu.memref_slice %arg11[%c0_i32_38, %c0_i32_42, %c0_i32_43] : memref<2x128x128xbf16, #tpu.memory_space<vmem>> -> memref<1x128x128xbf16, #tpu.memory_space<vmem>>
    %58 = tpu.memref_squeeze %57 : memref<1x128x128xbf16, #tpu.memory_space<vmem>> -> memref<128x128xbf16, #tpu.memory_space<vmem>>
    %59 = tpu.memref_slice %arg12[%c0_i32_39] : memref<2x!tpu.dma_semaphore, #tpu.memory_space<semaphore_mem>> -> memref<1x!tpu.dma_semaphore, #tpu.memory_space<semaphore_mem>>
    %60 = tpu.memref_squeeze %59 : memref<1x!tpu.dma_semaphore, #tpu.memory_space<semaphore_mem>> -> memref<!tpu.dma_semaphore, #tpu.memory_space<semaphore_mem>>
    tpu.enqueue_dma source(%56 : memref<128x128xbf16, #tpu.memory_space<any>>) target(%58 : memref<128x128xbf16, #tpu.memory_space<vmem>>) target_semaphore(%60 : memref<!tpu.dma_semaphore, #tpu.memory_space<semaphore_mem>>)
    %c0_44 = arith.constant 0 : index
    %c0_45 = arith.constant 0 : index
    %61 = vector.load %arg4[%c0_44, %c0_45] : memref<128x256xbf16, #tpu.memory_space<vmem>>, vector<128x256xbf16>
    %c0_46 = arith.constant 0 : index
    %c0_47 = arith.constant 0 : index
    %62 = vector.load %arg5[%c0_46, %c0_47] : memref<1x256xf32, #tpu.memory_space<vmem>>, vector<1x256xf32>
    %63 = arith.truncf %55 : vector<128x128xf32> to vector<128x128xbf16>
    %cst_48 = arith.constant dense<0.000000e+00> : vector<128x256xf32>
    %64 = tpu.matmul %63, %61, %cst_48 {dimension_numbers = #tpu.dot_dimension_numbers<[1], [0], [0], [1], [0, 0, 1, 1], [], []>} : vector<128x128xbf16>, vector<128x256xbf16>, vector<128x256xf32> -> vector<128x256xf32>
    %65 = vector.broadcast %62 : vector<1x256xf32> to vector<128x256xf32>
    %66 = arith.addf %64, %65 : vector<128x256xf32>
    %67 = vector.extract_strided_slice %66 {offsets = [0, 0], sizes = [128, 128], strides = [1, 1]} : vector<128x256xf32> to vector<128x128xf32>
    %cst_49 = arith.constant 0.000000e+00 : f32
    %68 = vector.broadcast %cst_49 : f32 to vector<128x128xf32>
    %69 = arith.maximumf %67, %68 : vector<128x128xf32>
    %70 = arith.truncf %69 : vector<128x128xf32> to vector<128x128xbf16>
    %c0_50 = arith.constant 0 : index
    %c0_51 = arith.constant 0 : index
    %71 = vector.load %arg13[%c0_50, %c0_51] : memref<128x128xbf16, #tpu.memory_space<vmem>>, vector<128x128xbf16>
    tpu.vector_store %arg13[%c0_50, %c0_51], %70 {strides = array<i32>} : memref<128x128xbf16, #tpu.memory_space<vmem>>, vector<128x128xbf16>,
    %72 = vector.extract_strided_slice %66 {offsets = [0, 128], sizes = [128, 128], strides = [1, 1]} : vector<128x256xf32> to vector<128x128xf32>
    %c0_52 = arith.constant 0 : index
    %c0_53 = arith.constant 0 : index
    %73 = vector.load %arg14[%c0_52, %c0_53] : memref<128x128xf32, #tpu.memory_space<vmem>>, vector<128x128xf32>
    tpu.vector_store %arg14[%c0_52, %c0_53], %72 {strides = array<i32>} : memref<128x128xf32, #tpu.memory_space<vmem>>, vector<128x128xf32>,
    %c0_i32_54 = arith.constant 0 : i32
    %c1_i32_55 = arith.constant 1 : i32
    %74 = arith.muli %c0_i32_54, %c1_i32_55 : i32
    %c0_i32_56 = arith.constant 0 : i32
    %75 = arith.addi %c0_i32_56, %74 : i32
    %c1_i32_57 = arith.constant 1 : i32
    %76 = arith.andi %75, %c1_i32_57 : i32
    %c128_i32_58 = arith.constant 128 : i32
    %77 = arith.muli %75, %c128_i32_58 : i32
    %78 = tpu.assume_multiple %77, 128 : i32
    %c0_i32_59 = arith.constant 0 : i32
    %79 = tpu.memref_slice %arg1[%78, %c0_i32_59] : memref<128x128xbf16, #tpu.memory_space<any>> -> memref<128x128xbf16, #tpu.memory_space<any>>
    %c0_i32_60 = arith.constant 0 : i32
    %c0_i32_61 = arith.constant 0 : i32
    %80 = tpu.memref_slice %arg11[%76, %c0_i32_60, %c0_i32_61] : memref<2x128x128xbf16, #tpu.memory_space<vmem>> -> memref<1x128x128xbf16, #tpu.memory_space<vmem>>
    %81 = tpu.memref_squeeze %80 : memref<1x128x128xbf16, #tpu.memory_space<vmem>> -> memref<128x128xbf16, #tpu.memory_space<vmem>>
    %82 = tpu.memref_slice %arg12[%76] : memref<2x!tpu.dma_semaphore, #tpu.memory_space<semaphore_mem>> -> memref<1x!tpu.dma_semaphore, #tpu.memory_space<semaphore_mem>>
    %83 = tpu.memref_squeeze %82 : memref<1x!tpu.dma_semaphore, #tpu.memory_space<semaphore_mem>> -> memref<!tpu.dma_semaphore, #tpu.memory_space<semaphore_mem>>
    tpu.wait_dma2 semaphore(%83 : memref<!tpu.dma_semaphore, #tpu.memory_space<semaphore_mem>>) src(%79 : memref<128x128xbf16, #tpu.memory_space<any>>) dst(%81 : memref<128x128xbf16, #tpu.memory_space<vmem>>)
    %c1_i32_62 = arith.constant 1 : i32
    %84 = arith.addi %75, %c1_i32_62 : i32
    %c1_i32_63 = arith.constant 1 : i32
    %85 = arith.cmpi slt, %84, %c1_i32_63 : i32
    %86 = arith.extui %85 : i1 to i32
    %c0_i32_64 = arith.constant 0 : i32
    %87 = arith.cmpi ne, %86, %c0_i32_64 : i32
    scf.if %87 {
      %c1_i32_94 = arith.constant 1 : i32
      %139 = arith.addi %75, %c1_i32_94 : i32
      %c128_i32_95 = arith.constant 128 : i32
      %140 = arith.muli %139, %c128_i32_95 : i32
      %141 = tpu.assume_multiple %140, 128 : i32
      %c1_i32_96 = arith.constant 1 : i32
      %142 = arith.subi %c1_i32_96, %76 : i32
      %c0_i32_97 = arith.constant 0 : i32
      %143 = tpu.memref_slice %arg1[%141, %c0_i32_97] : memref<128x128xbf16, #tpu.memory_space<any>> -> memref<128x128xbf16, #tpu.memory_space<any>>
      %c0_i32_98 = arith.constant 0 : i32
      %c0_i32_99 = arith.constant 0 : i32
      %144 = tpu.memref_slice %arg11[%142, %c0_i32_98, %c0_i32_99] : memref<2x128x128xbf16, #tpu.memory_space<vmem>> -> memref<1x128x128xbf16, #tpu.memory_space<vmem>>
      %145 = tpu.memref_squeeze %144 : memref<1x128x128xbf16, #tpu.memory_space<vmem>> -> memref<128x128xbf16, #tpu.memory_space<vmem>>
      %146 = tpu.memref_slice %arg12[%142] : memref<2x!tpu.dma_semaphore, #tpu.memory_space<semaphore_mem>> -> memref<1x!tpu.dma_semaphore, #tpu.memory_space<semaphore_mem>>
      %147 = tpu.memref_squeeze %146 : memref<1x!tpu.dma_semaphore, #tpu.memory_space<semaphore_mem>> -> memref<!tpu.dma_semaphore, #tpu.memory_space<semaphore_mem>>
      tpu.enqueue_dma source(%143 : memref<128x128xbf16, #tpu.memory_space<any>>) target(%145 : memref<128x128xbf16, #tpu.memory_space<vmem>>) target_semaphore(%147 : memref<!tpu.dma_semaphore, #tpu.memory_space<semaphore_mem>>)
    } else {
    }
    %88 = arith.index_cast %76 : i32 to index
    %c0_65 = arith.constant 0 : index
    %c0_66 = arith.constant 0 : index
    %89 = vector.load %arg11[%88, %c0_65, %c0_66] : memref<2x128x128xbf16, #tpu.memory_space<vmem>>, vector<1x128x128xbf16>
    %90 = vector.shape_cast %89 : vector<1x128x128xbf16> to vector<128x128xbf16>
    %c0_67 = arith.constant 0 : index
    %c0_68 = arith.constant 0 : index
    %91 = vector.load %arg13[%c0_67, %c0_68] : memref<128x128xbf16, #tpu.memory_space<vmem>>, vector<128x128xbf16>
    %cst_69 = arith.constant dense<0.000000e+00> : vector<128x128xf32>
    %92 = tpu.matmul %90, %91, %cst_69 {dimension_numbers = #tpu.dot_dimension_numbers<[1], [0], [0], [1], [0, 0, 1, 1], [], []>} : vector<128x128xbf16>, vector<128x128xbf16>, vector<128x128xf32> -> vector<128x128xf32>
    %93 = arith.index_cast %78 : i32 to index
    %c0_70 = arith.constant 0 : index
    %94 = vector.load %arg14[%93, %c0_70] : memref<128x128xf32, #tpu.memory_space<vmem>>, vector<128x128xf32>
    %95 = arith.addf %92, %94 : vector<128x128xf32>
    %cst_71 = arith.constant 0.000000e+00 : f32
    %96 = vector.broadcast %cst_71 : f32 to vector<128x128xf32>
    %97 = arith.maximumf %95, %96 : vector<128x128xf32>
    %98 = arith.mulf %97, %97 : vector<128x128xf32>
    %cst_72 = arith.constant dense<0.000000e+00> : vector<128xf32>
    %99 = vector.multi_reduction <add>, %98, %cst_72 [1] : vector<128x128xf32> to vector<128xf32>
    %100 = vector.shape_cast %99 : vector<128xf32> to vector<128x1xf32>
    %cst_73 = arith.constant 1.000000e-24 : f32
    %101 = vector.broadcast %cst_73 : f32 to vector<128x1xf32>
    %102 = arith.maximumf %100, %101 : vector<128x1xf32>
    %103 = math.rsqrt %102 : vector<128x1xf32>
    %104 = vector.broadcast %103 : vector<128x1xf32> to vector<128x128xf32>
    %105 = arith.mulf %97, %104 : vector<128x128xf32>
    %106 = arith.index_cast %78 : i32 to index
    %c0_74 = arith.constant 0 : index
    %107 = vector.load %arg15[%106, %c0_74] : memref<128x128xf32, #tpu.memory_space<vmem>>, vector<128x128xf32>
    tpu.vector_store %arg15[%106, %c0_74], %105 {strides = array<i32>} : memref<128x128xf32, #tpu.memory_space<vmem>>, vector<128x128xf32>,
    %c1_i32_75 = arith.constant 1 : i32
    %c0_76 = arith.constant 0 : index
    %c0_77 = arith.constant 0 : index
    %108 = vector.load %arg15[%c0_76, %c0_77] : memref<128x128xf32, #tpu.memory_space<vmem>>, vector<128x128xf32>
    %cst_78 = arith.constant 0.000000e+00 : f32
    %109 = vector.broadcast %cst_78 : f32 to vector<128x128xf32>
    %110 = arith.maximumf %108, %109 : vector<128x128xf32>
    %111 = arith.truncf %110 : vector<128x128xf32> to vector<128x128xbf16>
    %c0_79 = arith.constant 0 : index
    %c0_80 = arith.constant 0 : index
    %112 = vector.load %arg6[%c0_79, %c0_80] : memref<128x128xbf16, #tpu.memory_space<vmem>>, vector<128x128xbf16>
    %cst_81 = arith.constant dense<0.000000e+00> : vector<128x128xf32>
    %113 = tpu.matmul %111, %112, %cst_81 {dimension_numbers = #tpu.dot_dimension_numbers<[1], [0], [0], [1], [0, 0, 1, 1], [], []>} : vector<128x128xbf16>, vector<128x128xbf16>, vector<128x128xf32> -> vector<128x128xf32>
    %c0_82 = arith.constant 0 : index
    %c0_83 = arith.constant 0 : index
    %114 = vector.load %arg7[%c0_82, %c0_83] : memref<1x128xf32, #tpu.memory_space<vmem>>, vector<1x128xf32>
    %115 = vector.broadcast %114 : vector<1x128xf32> to vector<128x128xf32>
    %116 = arith.addf %113, %115 : vector<128x128xf32>
    %117 = arith.truncf %116 : vector<128x128xf32> to vector<128x128xbf16>
    %c0_84 = arith.constant 0 : index
    %c0_85 = arith.constant 0 : index
    %118 = vector.load %arg8[%c0_84, %c0_85] : memref<128x128xbf16, #tpu.memory_space<vmem>>, vector<128x128xbf16>
    %cst_86 = arith.constant dense<0.000000e+00> : vector<128x128xf32>
    %119 = tpu.matmul %117, %118, %cst_86 {dimension_numbers = #tpu.dot_dimension_numbers<[1], [0], [0], [1], [0, 0, 1, 1], [], []>} : vector<128x128xbf16>, vector<128x128xbf16>, vector<128x128xf32> -> vector<128x128xf32>
    %c0_87 = arith.constant 0 : index
    %c0_88 = arith.constant 0 : index
    %120 = vector.load %arg9[%c0_87, %c0_88] : memref<1x128xf32, #tpu.memory_space<vmem>>, vector<1x128xf32>
    %121 = vector.broadcast %120 : vector<1x128xf32> to vector<128x128xf32>
    %122 = arith.addf %119, %121 : vector<128x128xf32>
    %123 = tpu.iota {dimensions = array<i32: 1>} : vector<128x128xi32>
    %c4_i32 = arith.constant 4 : i32
    %124 = vector.broadcast %c4_i32 : i32 to vector<128x128xi32>
    %125 = arith.cmpi slt, %123, %124 : vector<128x128xi32>
    %cst_89 = arith.constant -1.000000e+30 : f32
    %126 = vector.broadcast %cst_89 : f32 to vector<128x128xf32>
    %127 = arith.select %125, %122, %126 : vector<128x128xi1>, vector<128x128xf32>
    %cst_90 = arith.constant dense<0xFF800000> : vector<128xf32>
    %128 = vector.multi_reduction <maximumf>, %127, %cst_90 [1] : vector<128x128xf32> to vector<128xf32>
    %129 = vector.shape_cast %128 : vector<128xf32> to vector<128x1xf32>
    %130 = vector.broadcast %129 : vector<128x1xf32> to vector<128x128xf32>
    %131 = arith.subf %127, %130 : vector<128x128xf32>
    %132 = math.exp %131 : vector<128x128xf32>
    %cst_91 = arith.constant dense<0.000000e+00> : vector<128xf32>
    %133 = vector.multi_reduction <add>, %132, %cst_91 [1] : vector<128x128xf32> to vector<128xf32>
    %134 = vector.shape_cast %133 : vector<128xf32> to vector<128x1xf32>
    %135 = math.log %134 : vector<128x1xf32>
    %136 = vector.broadcast %135 : vector<128x1xf32> to vector<128x128xf32>
    %137 = arith.subf %131, %136 : vector<128x128xf32>
    %c0_92 = arith.constant 0 : index
    %c0_93 = arith.constant 0 : index
    %138 = vector.load %arg10[%c0_92, %c0_93] : memref<128x128xf32, #tpu.memory_space<vmem>>, vector<128x128xf32>
    tpu.vector_store %arg10[%c0_92, %c0_93], %137 {strides = array<i32>} : memref<128x128xf32, #tpu.memory_space<vmem>>, vector<128x128xf32>,
    return
  }
}

</mosaic_0001>

<bundles_post_ra>
// kernel: tpu_custom_call.1
= control target key start
LH: loop header
LB: loop body
LE: loop exit
PB: predicated region body
PF: predicated region fallthrough
CT: control target
= control target key end

     0   :  { %15 = vsyncpa [#allocation8], 0  ;;  %s3645_s0 = inlined_call_operand.hbm [shape: f32[128,128], index: 0, kind: input, shape index: {}]   ;;  %s3646_s1 = inlined_call_operand.hbm [shape: bf16[128,128], index: 1, kind: input, shape index: {}]   ;;  %s3647_s2 = inlined_call_operand.hbm [shape: bf16[128,256], index: 2, kind: input, shape index: {}]   ;;  %s3648_s3 = inlined_call_operand.vmem [shape: f32[1,256], index: 3, kind: input, shape index: {}]   ;;  %s3649_s4 = inlined_call_operand.hbm [shape: bf16[128,256], index: 4, kind: input, shape index: {}]   ;;  %s3650_s5 = inlined_call_operand.vmem [shape: f32[1,256], index: 5, kind: input, shape index: {}]   ;;  %s3651_s6 = inlined_call_operand.hbm [shape: bf16[128,128], index: 6, kind: input, shape index: {}]   ;;  %s3652_s7 = inlined_call_operand.vmem [shape: f32[1,128], index: 7, kind: input, shape index: {}]   ;;  %s3653_s8 = inlined_call_operand.hbm [shape: bf16[128,128], index: 8, kind: input, shape index: {}]   ;;  %s3654_s9 = inlined_call_operand.vmem [shape: f32[1,128], index: 9, kind: input, shape index: {}]   ;;  %s3655_s10 = inlined_call_operand.hbm [shape: f32[128,128], index: 10, kind: output, shape index: {}]  }
   0x1   :  { %16 = vsyncpa [#allocation11], 0 }
   0x2   :  { %17 = vsyncpa [#allocation14], 0 }
   0x3   :  { %18 = vsyncpa [#allocation9], 0  ;;  %s36_s15 = sshll.u32 %s3647_s2, 4  ;;  %s3018_s16 = smov [#allocation10]   ;;  %s37_s15 = int_to_ptr.hbm [resolvable:$true] %s36_s15 }
   0x4   :  { %s38_s17 = sshll.u32 %s3018_s16, 4  ;;  %s66_s20 = sshll.u32 %s3651_s6, 4  ;;  %s39_s17 = int_to_ptr.vmem [resolvable:$true] %s38_s17  ;;  %s67_s20 = int_to_ptr.hbm [resolvable:$true] %s66_s20 }
   0x5   :  { %s3019_s21 = smov 128   ;;  %s3020_s22 = smov 8  }
   0x6   :  { %44 = dma.hbm_to_vmem [thread:$0]  %s37_s15, 2048, %s39_s17, [#allocation11], %s3019_s21, %s3019_s21, %s3020_s22  }
   0x7   :  { %s3021_s23 = smov [#allocation13]   ;;  %s3022_s25 = smov 64  }
   0x8   :  { %s68_s24 = sshll.u32 %s3021_s23, 4  ;;  %s3023_s2 = smov 4   ;;  %s69_s24 = int_to_ptr.vmem [resolvable:$true] %s68_s24 }
   0x9   :  { %74 = dma.hbm_to_vmem [thread:$0]  %s67_s20, 1024, %s69_s24, [#allocation14], %s3022_s25, %s3022_s25, %s3023_s2  }
   0xa   :  { %s23_s28 = sshll.u32 %s3645_s0, 4  ;;  %s3024_s29 = smov [#allocation7]   ;;  %s24_s28 = int_to_ptr.hbm [resolvable:$true] %s23_s28 }
   0xb   :  { %s25_s6 = sshll.u32 %s3024_s29, 4  ;;  %s51_s12 = sshll.u32 %s3649_s4, 4  ;;  %s26_s6 = int_to_ptr.vmem [resolvable:$true] %s25_s6  ;;  %s52_s12 = int_to_ptr.hbm [resolvable:$true] %s51_s12 }
   0xc   :  { %31 = dma.hbm_to_vmem [thread:$0]  %s24_s28, 2048, %s26_s6, [#allocation8], %s3019_s21, %s3019_s21, %s3020_s22  }
   0xd   :  { %s3025_s13 = smov [#allocation12]   ;;  %s81_s17 = sshll.u32 %s3653_s8, 4  ;;  %s82_s17 = int_to_ptr.hbm [resolvable:$true] %s81_s17 }
   0xe   :  { %s53_s14 = sshll.u32 %s3025_s13, 4  ;;  %s3026_s0 = smov [#allocation15]   ;;  %s54_s14 = int_to_ptr.vmem [resolvable:$true] %s53_s14 }
   0xf   :  { %59 = dma.hbm_to_vmem [thread:$0]  %s52_s12, 2048, %s54_s14, [#allocation11], %s3019_s21, %s3019_s21, %s3020_s22  }
  0x10   :  { %s83_s18 = sshll.u32 %s3026_s0, 4  ;;  %s84_s18 = int_to_ptr.vmem [resolvable:$true] %s83_s18 }
  0x11   :  { %89 = dma.hbm_to_vmem [thread:$0]  %s82_s17, 1024, %s84_s18, [#allocation14], %s3022_s25, %s3022_s25, %s3023_s2  }
  0x12   :  { %3006 = dma.done.wait [#allocation8], 2048  }
  0x13   :  { %3007 = vsyncadd [#allocation8], 4294965248 }
  0x14   :  { %3008 = dma.done.wait [#allocation11], 4096  }
  0x15   :  { %3009 = vsyncadd [#allocation11], 4294963200 }
  0x16   :  { %3010 = dma.done.wait [#allocation14], 2048  }
  0x17   :  { %3011 = vsyncadd [#allocation14], 4294965248  ;;  %v2235_v0 = vld [vmem:[#allocation10 + $0x70] sm:$0xf]  ;;  %v2514_v1 = vld [vmem:[#allocation10 + $0x74] sm:$0xf0] }
  0x18   :  { %v2513_v2 = vld [vmem:[#allocation10 + $0x74] sm:$0xf]  ;;  %v2236_v3 = vor.u32 %v2514_v1, %v2235_v0  ;;  %v2237_v4 = vld [vmem:[#allocation10 + $0x78] sm:$0xf0]  ;;  %v2227_v5 = vld [vmem:[#allocation10 + $0x60] sm:$0xf] }
  0x19   :  { %v2512_v6 = vld [vmem:[#allocation10 + $0x64] sm:$0xf0]  ;;  %v2240_v7 = vor.u32 %v2513_v2, %v2237_v4  ;;  %v2511_v8 = vld [vmem:[#allocation10 + $0x64] sm:$0xf]  ;;  %v2229_v9 = vld [vmem:[#allocation10 + $0x68] sm:$0xf0] }
  0x1a   :  { %251 = vmatpush.bf16.msra.mxu0 %v2236_v3  ;;  %v2228_v10 = vor.u32 %v2512_v6, %v2227_v5  ;;  %v2232_v11 = vor.u32 %v2511_v8, %v2229_v9  ;;  %v2219_v12 = vld [vmem:[#allocation10 + $0x50] sm:$0xf]  ;;  %v2510_v13 = vld [vmem:[#allocation10 + $0x54] sm:$0xf0]  ;;  %v2509_v14 = vld [vmem:[#allocation10 + $0x54] sm:$0xf] }
  0x1b   :  { %300 = vmatpush.bf16.msra.mxu1 %v2240_v7  ;;  %v2221_v15 = vld [vmem:[#allocation10 + $0x58] sm:$0xf0]  ;;  %v2220_v16 = vor.u32 %v2510_v13, %v2219_v12  ;;  %v2211_v18 = vld [vmem:[#allocation10 + $0x40] sm:$0xf]  ;;  %v2508_v19 = vld [vmem:[#allocation10 + $0x44] sm:$0xf0] }
  0x1c   :  { %v2224_v17 = vor.u32 %v2509_v14, %v2221_v15  ;;  %v2507_v20 = vld [vmem:[#allocation10 + $0x44] sm:$0xf]  ;;  %v2213_v21 = vld [vmem:[#allocation10 + $0x48] sm:$0xf0]  ;;  %v2212_v22 = vor.u32 %v2508_v19, %v2211_v18  ;;  %v2203_v24 = vld [vmem:[#allocation10 + $0x30] sm:$0xf] }
  0x1d   :  { %v2216_v23 = vor.u32 %v2507_v20, %v2213_v21  ;;  %v2506_v25 = vld [vmem:[#allocation10 + $0x34] sm:$0xf0]  ;;  %v2505_v26 = vld [vmem:[#allocation10 + $0x34] sm:$0xf]  ;;  %v2205_v27 = vld [vmem:[#allocation10 + $0x38] sm:$0xf0] }
  0x1e   :  { %252 = vmatpush.bf16.msra.mxu0 %v2228_v10  ;;  %v2204_v28 = vor.u32 %v2506_v25, %v2203_v24  ;;  %v2208_v29 = vor.u32 %v2505_v26, %v2205_v27  ;;  %v2195_v30 = vld [vmem:[#allocation10 + $0x20] sm:$0xf]  ;;  %v2504_v31 = vld [vmem:[#allocation10 + $0x24] sm:$0xf0]  ;;  %v2503_v32 = vld [vmem:[#allocation10 + $0x24] sm:$0xf] }
  0x1f   :  { %301 = vmatpush.bf16.msra.mxu1 %v2232_v11  ;;  %v2197_v33 = vld [vmem:[#allocation10 + $0x28] sm:$0xf0]  ;;  %v2196_v34 = vor.u32 %v2504_v31, %v2195_v30  ;;  %v2187_v36 = vld [vmem:[#allocation10 + $0x10] sm:$0xf]  ;;  %v2502_v37 = vld [vmem:[#allocation10 + $0x14] sm:$0xf0] }
  0x20   :  { %v2200_v35 = vor.u32 %v2503_v32, %v2197_v33  ;;  %v2501_v38 = vld [vmem:[#allocation10 + $0x14] sm:$0xf]  ;;  %v2189_v39 = vld [vmem:[#allocation10 + $0x18] sm:$0xf0]  ;;  %v2188_v40 = vor.u32 %v2502_v37, %v2187_v36  ;;  %v2179_v42 = vld [vmem:[#allocation10] sm:$0xf] }
  0x21   :  { %v2192_v41 = vor.u32 %v2501_v38, %v2189_v39  ;;  %v2500_v43 = vld [vmem:[#allocation10 + $0x4] sm:$0xf0]  ;;  %v2499_v44 = vld [vmem:[#allocation10 + $0x4] sm:$0xf]  ;;  %v2181_v45 = vld [vmem:[#allocation10 + $0x8] sm:$0xf0] }
  0x22   :  { %253 = vmatpush.bf16.msra.mxu0 %v2220_v16  ;;  %v2180_v46 = vor.u32 %v2500_v43, %v2179_v42  ;;  %v112_v47 = vld [vmem:[#allocation7] sm:$0xff]  ;;  %v113_v48 = vld [vmem:[#allocation7 + $0x8] sm:$0xff]  ;;  %v2184_v49 = vor.u32 %v2499_v44, %v2181_v45  ;;  %v114_v51 = vld [vmem:[#allocation7 + $0x10] sm:$0xff]  ;;  %s135_s23 = sshll.u32 %s3646_s1, 4  ;;  %s3027_s24 = smov [#allocation2]   ;;  %s3118_s23 = int_to_ptr.hbm [resolvable:$true] %s135_s23 }
  0x23   :  { %302 = vmatpush.bf16.msra.mxu1 %v2224_v17  ;;  %v158_v50 = vpack.c.bf16 %v113_v48, %v112_v47  ;;  %v115_v52 = vld [vmem:[#allocation7 + $0x18] sm:$0xff]  ;;  %v116_v54 = vld [vmem:[#allocation7 + $0x20] sm:$0xff]  ;;  %v117_v55 = vld [vmem:[#allocation7 + $0x28] sm:$0xff]  ;;  %s3116_s25 = sshll.u32 %s3027_s24, 4  ;;  %s138_s25 = int_to_ptr.vmem [resolvable:$true] %s3116_s25 }
  0x24   :  { %v159_v53 = vpack.c.bf16 %v115_v52, %v114_v51  ;;  %v160_v56 = vpack.c.bf16 %v117_v55, %v116_v54  ;;  %v118_v57 = vld [vmem:[#allocation7 + $0x30] sm:$0xff]  ;;  %v119_v58 = vld [vmem:[#allocation7 + $0x38] sm:$0xff]  ;;  %v120_v60 = vld [vmem:[#allocation7 + $0x40] sm:$0xff]  ;;  %140 = dma.hbm_to_vmem [thread:$0]  %s3118_s23, 1024, %s138_s25, [#allocation3] }
  0x25   :  { %v161_v59 = vpack.c.bf16 %v119_v58, %v118_v57  ;;  %v121_v61 = vld [vmem:[#allocation7 + $0x48] sm:$0xff]  ;;  %v122_v63 = vld [vmem:[#allocation7 + $0x50] sm:$0xff]  ;;  %v123_v0 = vld [vmem:[#allocation7 + $0x58] sm:$0xff] }
  0x26   :  { %254 = vmatpush.bf16.msra.mxu0 %v2212_v22  ;;  %v162_v62 = vpack.c.bf16 %v121_v61, %v120_v60  ;;  %v163_v1 = vpack.c.bf16 %v123_v0, %v122_v63  ;;  %v124_v2 = vld [vmem:[#allocation7 + $0x60] sm:$0xff]  ;;  %v125_v3 = vld [vmem:[#allocation7 + $0x68] sm:$0xff]  ;;  %v126_v5 = vld [vmem:[#allocation7 + $0x70] sm:$0xff] }
  0x27   :  { %303 = vmatpush.bf16.msra.mxu1 %v2216_v23  ;;  %v164_v4 = vpack.c.bf16 %v125_v3, %v124_v2  ;;  %v127_v6 = vld [vmem:[#allocation7 + $0x78] sm:$0xff]  ;;  %v157_v8 = vld [vmem:[%s3648_s3] sm:$0x3] }
  0x28   :  { %v165_v7 = vpack.c.bf16 %v127_v6, %v126_v5  ;;  %v3111_v9 = vperm.slane %v157_v8, 1  ;;  %v3127_v13 = vperm.slane %v157_v8, 0 }
  0x2a   :  { %255 = vmatpush.bf16.msra.mxu0 %v2204_v28 }
  0x2b   :  { %304 = vmatpush.bf16.msra.mxu1 %v2208_v29 }
  0x2e   :  { %256 = vmatpush.bf16.msra.mxu0 %v2196_v34 }
  0x2f   :  { %305 = vmatpush.bf16.msra.mxu1 %v2200_v35 }
  0x32   :  { %257 = vmatpush.bf16.msra.mxu0 %v2188_v40 }
  0x33   :  { %306 = vmatpush.bf16.msra.mxu1 %v2192_v41 }
  0x36   :  { %258 = vmatpush.bf16.msra.mxu0 %v2180_v46 }
  0x37   :  { %307 = vmatpush.bf16.msra.mxu1 %v2184_v49 }
  0x39   :  { %259 = vmatmul.bf16.vlgmr.msra.gmra.mxu0 %v158_v50 }
  0x3a   :  { %308 = vmatmul.bf16.vlgmr.msra.gmra.mxu1 %v158_v50 }
  0x49   :  { %264 = vmatmul.bf16.gmra.mxu0 %v159_v53 }
  0x4a   :  { %313 = vmatmul.bf16.gmra.mxu1 %v159_v53 }
  0x59   :  { %269 = vmatmul.bf16.gmra.mxu0 %v160_v56 }
  0x5a   :  { %318 = vmatmul.bf16.gmra.mxu1 %v160_v56 }
  0x69   :  { %274 = vmatmul.bf16.gmra.mxu0 %v161_v59 }
  0x6a   :  { %323 = vmatmul.bf16.gmra.mxu1 %v161_v59 }
  0x79   :  { %279 = vmatmul.bf16.gmra.mxu0 %v162_v62 }
  0x7a   :  { %328 = vmatmul.bf16.gmra.mxu1 %v162_v62 }
  0x89   :  { %284 = vmatmul.bf16.gmra.mxu0 %v163_v1 }
  0x8a   :  { %333 = vmatmul.bf16.gmra.mxu1 %v163_v1 }
  0x99   :  { %289 = vmatmul.bf16.gmra.mxu0 %v164_v4 }
  0x9a   :  { %338 = vmatmul.bf16.gmra.mxu1 %v164_v4 }
  0xa9   :  { %294 = vmatmul.bf16.gmra.mxu0 %v165_v7 }
  0xaa   :  { %343 = vmatmul.bf16.gmra.mxu1 %v165_v7 }
  0xb6   :  { %v260_v10 = vpop.f32.mrf.mxu0 }
  0xb7   :  { %v309_v11 = vpop.f32.mrf.mxu1  ;;  %v261_v14 = vadd.f32 %v260_v10, %v3127_v13 }
  0xb8   :  { %v3125_v12 = vadd.f32 %v309_v11, %v3111_v9 }
  0xb9   :  { %v349_v19 = vmax.f32 %v261_v14, 0.0 }
  0xbe   :  { %v262_v15 = vpop.f32.mrf.mxu0 }
  0xbf   :  { %v263_v16 = vadd.f32 %v262_v15, %v3127_v13  ;;  %v311_v17 = vpop.f32.mrf.mxu1 }
  0xc0   :  { %v3132_v18 = vadd.f32 %v311_v17, %v3111_v9 }
  0xc1   :  { %v350_v20 = vmax.f32 %v263_v16, 0.0 }
  0xc3   :  { %v2582_v21 = vpack.c.bf16 %v350_v20, %v349_v19 }
  0xc5   :  { %2583 = vst [vmem:[#allocation4 + $0x30] sm:$0xff] %v2582_v21  }
  0xc6   :  { %v265_v22 = vpop.f32.mrf.mxu0 }
  0xc7   :  { %v314_v23 = vpop.f32.mrf.mxu1  ;;  %v266_v25 = vadd.f32 %v265_v22, %v3127_v13 }
  0xc8   :  { %v3135_v24 = vadd.f32 %v314_v23, %v3111_v9 }
  0xc9   :  { %v351_v30 = vmax.f32 %v266_v25, 0.0 }
  0xce   :  { %v267_v26 = vpop.f32.mrf.mxu0 }
  0xcf   :  { %v268_v27 = vadd.f32 %v267_v26, %v3127_v13  ;;  %v316_v28 = vpop.f32.mrf.mxu1 }
  0xd0   :  { %v3140_v29 = vadd.f32 %v316_v28, %v3111_v9 }
  0xd1   :  { %v352_v31 = vmax.f32 %v268_v27, 0.0 }
  0xd3   :  { %v2587_v32 = vpack.c.bf16 %v352_v31, %v351_v30 }
  0xd5   :  { %2659 = vst [vmem:[#allocation4] sm:$0xff] %v2587_v32  }
  0xd6   :  { %v270_v33 = vpop.f32.mrf.mxu0 }
  0xd7   :  { %v319_v34 = vpop.f32.mrf.mxu1  ;;  %v271_v36 = vadd.f32 %v270_v33, %v3127_v13 }
  0xd8   :  { %v3143_v35 = vadd.f32 %v319_v34, %v3111_v9 }
  0xd9   :  { %v353_v41 = vmax.f32 %v271_v36, 0.0 }
  0xde   :  { %v272_v37 = vpop.f32.mrf.mxu0 }
  0xdf   :  { %v273_v38 = vadd.f32 %v272_v37, %v3127_v13  ;;  %v321_v39 = vpop.f32.mrf.mxu1 }
  0xe0   :  { %v3148_v40 = vadd.f32 %v321_v39, %v3111_v9 }
  0xe1   :  { %v354_v42 = vmax.f32 %v273_v38, 0.0 }
  0xe3   :  { %v2592_v43 = vpack.c.bf16 %v354_v42, %v353_v41 }
  0xe5   :  { %2660 = vst [vmem:[#allocation4 + $0x18] sm:$0xff] %v2592_v43  }
  0xe6   :  { %v275_v44 = vpop.f32.mrf.mxu0 }
  0xe7   :  { %v324_v45 = vpop.f32.mrf.mxu1  ;;  %v276_v47 = vadd.f32 %v275_v44, %v3127_v13 }
  0xe8   :  { %v3151_v46 = vadd.f32 %v324_v45, %v3111_v9 }
  0xe9   :  { %v355_v52 = vmax.f32 %v276_v47, 0.0 }
  0xee   :  { %v277_v48 = vpop.f32.mrf.mxu0 }
  0xef   :  { %v278_v49 = vadd.f32 %v277_v48, %v3127_v13  ;;  %v326_v50 = vpop.f32.mrf.mxu1 }
  0xf0   :  { %v3156_v51 = vadd.f32 %v326_v50, %v3111_v9 }
  0xf1   :  { %v356_v53 = vmax.f32 %v278_v49, 0.0 }
  0xf3   :  { %v2597_v54 = vpack.c.bf16 %v356_v53, %v355_v52 }
  0xf5   :  { %2661 = vst [vmem:[#allocation4 + $0x10] sm:$0xff] %v2597_v54  }
  0xf6   :  { %v280_v55 = vpop.f32.mrf.mxu0 }
  0xf7   :  { %v329_v56 = vpop.f32.mrf.mxu1  ;;  %v281_v58 = vadd.f32 %v280_v55, %v3127_v13 }
  0xf8   :  { %v3159_v57 = vadd.f32 %v329_v56, %v3111_v9 }
  0xf9   :  { %v357_v63 = vmax.f32 %v281_v58, 0.0 }
  0xfe   :  { %v282_v59 = vpop.f32.mrf.mxu0 }
  0xff   :  { %v283_v60 = vadd.f32 %v282_v59, %v3127_v13  ;;  %v331_v61 = vpop.f32.mrf.mxu1 }
 0x100   :  { %v3164_v62 = vadd.f32 %v331_v61, %v3111_v9 }
 0x101   :  { %v358_v0 = vmax.f32 %v283_v60, 0.0 }
 0x103   :  { %v2602_v1 = vpack.c.bf16 %v358_v0, %v357_v63 }
 0x105   :  { %2662 = vst [vmem:[#allocation4 + $0x8] sm:$0xff] %v2602_v1  }
 0x106   :  { %v285_v2 = vpop.f32.mrf.mxu0 }
 0x107   :  { %v334_v3 = vpop.f32.mrf.mxu1  ;;  %v286_v5 = vadd.f32 %v285_v2, %v3127_v13 }
 0x108   :  { %v3167_v4 = vadd.f32 %v334_v3, %v3111_v9 }
 0x109   :  { %v359_v11 = vmax.f32 %v286_v5, 0.0 }
 0x10e   :  { %v287_v6 = vpop.f32.mrf.mxu0 }
 0x10f   :  { %v288_v7 = vadd.f32 %v287_v6, %v3127_v13  ;;  %v336_v8 = vpop.f32.mrf.mxu1 }
 0x110   :  { %v3172_v10 = vadd.f32 %v336_v8, %v3111_v9 }
 0x111   :  { %v360_v14 = vmax.f32 %v288_v7, 0.0 }
 0x113   :  { %v2607_v15 = vpack.c.bf16 %v360_v14, %v359_v11 }
 0x115   :  { %2663 = vst [vmem:[#allocation4 + $0x20] sm:$0xff] %v2607_v15  }
 0x116   :  { %v290_v16 = vpop.f32.mrf.mxu0 }
 0x117   :  { %v339_v17 = vpop.f32.mrf.mxu1  ;;  %v291_v20 = vadd.f32 %v290_v16, %v3127_v13 }
 0x118   :  { %v3175_v19 = vadd.f32 %v339_v17, %v3111_v9 }
 0x119   :  { %v361_v26 = vmax.f32 %v291_v20, 0.0 }
 0x11e   :  { %v292_v21 = vpop.f32.mrf.mxu0 }
 0x11f   :  { %v293_v22 = vadd.f32 %v292_v21, %v3127_v13  ;;  %v341_v23 = vpop.f32.mrf.mxu1 }
 0x120   :  { %v3180_v25 = vadd.f32 %v341_v23, %v3111_v9 }
 0x121   :  { %v362_v27 = vmax.f32 %v293_v22, 0.0 }
 0x123   :  { %v2612_v28 = vpack.c.bf16 %v362_v27, %v361_v26 }
 0x125   :  { %2664 = vst [vmem:[#allocation4 + $0x28] sm:$0xff] %v2612_v28  }
 0x126   :  { %v295_v30 = vpop.f32.mrf.mxu0 }
 0x127   :  { %v344_v31 = vpop.f32.mrf.mxu1  ;;  %v296_v33 = vadd.f32 %v295_v30, %v3127_v13 }
 0x128   :  { %v3183_v32 = vadd.f32 %v344_v31, %v3111_v9 }
 0x129   :  { %v363_v39 = vmax.f32 %v296_v33, 0.0 }
 0x12e   :  { %v297_v34 = vpop.f32.mrf.mxu0 }
 0x12f   :  { %v298_v36 = vadd.f32 %v297_v34, %v3127_v13  ;;  %v346_v37 = vpop.f32.mrf.mxu1 }
 0x130   :  { %v3188_v38 = vadd.f32 %v346_v37, %v3111_v9 }
 0x131   :  { %v364_v41 = vmax.f32 %v298_v36, 0.0 }
 0x133   :  { %v2617_v42 = vpack.c.bf16 %v364_v41, %v363_v39 }
 0x135   :  { %2665 = vst [vmem:[#allocation4 + $0x38] sm:$0xff] %v2617_v42  }
 0x136   :  { %3012 = dma.done.wait [#allocation3], 1024 }
 0x137   :  { %3013 = vsyncadd [#allocation3], 4294966272  ;;  %v2529_v44 = vld [vmem:[#allocation4 + $0x28] sm:$0xff]  ;;  %v2528_v45 = vld [vmem:[#allocation4 + $0x20] sm:$0xff] }
 0x138   :  { %v2527_v47 = vld [vmem:[#allocation4 + $0x8] sm:$0xff]  ;;  %v2526_v48 = vld [vmem:[#allocation4 + $0x10] sm:$0xff]  ;;  %v2525_v13 = vld [vmem:[#allocation4 + $0x18] sm:$0xff] }
 0x139   :  { %v2524_v9 = vld [vmem:[#allocation4] sm:$0xff]  ;;  %v2523_v49 = vld [vmem:[#allocation4 + $0x30] sm:$0xff]  ;;  %v2516_v52 = vld [vmem:[#allocation2 + $0x8] sm:$0xff] }
 0x13a   :  { %v2515_v50 = vld [vmem:[#allocation2] sm:$0xff]  ;;  %v2517_v53 = vld [vmem:[#allocation2 + $0x10] sm:$0xff]  ;;  %v2518_v54 = vld [vmem:[#allocation2 + $0x18] sm:$0xff] }
 0x13b   :  { %v2519_v55 = vld [vmem:[#allocation2 + $0x20] sm:$0xff]  ;;  %v2520_v56 = vld [vmem:[#allocation2 + $0x28] sm:$0xff]  ;;  %v2521_v58 = vld [vmem:[#allocation2 + $0x30] sm:$0xff] }
 0x13c   :  { %v2530_v43 = vld [vmem:[#allocation4 + $0x38] sm:$0xff] }
 0x13d   :  { %561 = vmatpush.bf16.msra.mxu2 %v2530_v43  ;;  %v2522_v59 = vld [vmem:[#allocation2 + $0x38] sm:$0xff] }
 0x13e   :  { %926 = dma.hbm_to_vmem [thread:$0]  %s3118_s23, 1024, %s138_s25, [#allocation3] }
 0x141   :  { %562 = vmatpush.bf16.msra.mxu2 %v2529_v44 }
 0x145   :  { %563 = vmatpush.bf16.msra.mxu2 %v2528_v45 }
 0x149   :  { %564 = vmatpush.bf16.msra.mxu2 %v2527_v47 }
 0x14d   :  { %565 = vmatpush.bf16.msra.mxu2 %v2526_v48 }
 0x151   :  { %566 = vmatpush.bf16.msra.mxu2 %v2525_v13 }
 0x155   :  { %567 = vmatpush.bf16.msra.mxu2 %v2524_v9  ;;  %v2546_v9 = vld [vmem:[#allocation12 + $0x74] sm:$0xf0] }
 0x159   :  { %568 = vmatpush.bf16.msra.mxu2 %v2523_v49 }
 0x15c   :  { %569 = vmatmul.bf16.vlgmr.msra.gmra.mxu2 %v2515_v50  ;;  %v2545_v50 = vld [vmem:[#allocation12 + $0x74] sm:$0xf] }
 0x16c   :  { %574 = vmatmul.bf16.gmra.mxu2 %v2516_v52  ;;  %v2365_v52 = vld [vmem:[#allocation12 + $0x78] sm:$0xf0] }
 0x17c   :  { %579 = vmatmul.bf16.gmra.mxu2 %v2517_v53 }
 0x18c   :  { %584 = vmatmul.bf16.gmra.mxu2 %v2518_v54  ;;  %v2355_v54 = vld [vmem:[#allocation12 + $0x60] sm:$0xf] }
 0x19c   :  { %589 = vmatmul.bf16.gmra.mxu2 %v2519_v55  ;;  %v2544_v55 = vld [vmem:[#allocation12 + $0x64] sm:$0xf0] }
 0x1ac   :  { %594 = vmatmul.bf16.gmra.mxu2 %v2520_v56  ;;  %v2543_v56 = vld [vmem:[#allocation12 + $0x64] sm:$0xf] }
 0x1bc   :  { %599 = vmatmul.bf16.gmra.mxu2 %v2521_v58 }
 0x1cc   :  { %604 = vmatmul.bf16.gmra.mxu2 %v2522_v59  ;;  %v2356_v59 = vor.u32 %v2544_v55, %v2355_v54 }
 0x1df   :  { %v570_v60 = vpop.f32.mrf.mxu2 }
 0x1e0   :  { %v571_v61 = vadd.f32 %v570_v60, %v3125_v12 }
 0x1e2   :  { %v3194_v63 = vmax.f32 %v571_v61, 0.0 }
 0x1e4   :  { %v626_v0 = vmul.f32 %v3194_v63, %v3194_v63 }
 0x1e6   :  { %642 = vadd.xlane.f32.xlu0 %v626_v0 }
 0x1e7   :  { %v572_v1 = vpop.f32.mrf.mxu2 }
 0x1e8   :  { %v573_v2 = vadd.f32 %v572_v1, %v3132_v18  ;;  %v2347_v1 = vld [vmem:[#allocation12 + $0x50] sm:$0xf] }
 0x1ea   :  { %v3199_v3 = vmax.f32 %v573_v2, 0.0  ;;  %v2542_v2 = vld [vmem:[#allocation12 + $0x54] sm:$0xf0] }
 0x1ec   :  { %v627_v5 = vmul.f32 %v3199_v3, %v3199_v3 }
 0x1ee   :  { %644 = vadd.xlane.f32.xlu0 %v627_v5  ;;  %v2348_v5 = vor.u32 %v2542_v2, %v2347_v1 }
 0x1ef   :  { %v575_v6 = vpop.f32.mrf.mxu2 }
 0x1f0   :  { %v576_v7 = vadd.f32 %v575_v6, %v3135_v24  ;;  %v2541_v6 = vld [vmem:[#allocation12 + $0x54] sm:$0xf] }
 0x1f2   :  { %v3204_v8 = vmax.f32 %v576_v7, 0.0  ;;  %v2349_v7 = vld [vmem:[#allocation12 + $0x58] sm:$0xf0] }
 0x1f4   :  { %v628_v12 = vmul.f32 %v3204_v8, %v3204_v8 }
 0x1f6   :  { %646 = vadd.xlane.f32.xlu1 %v628_v12 }
 0x1f7   :  { %v577_v11 = vpop.f32.mrf.mxu2 }
 0x1f8   :  { %v578_v14 = vadd.f32 %v577_v11, %v3140_v29  ;;  %v2352_v11 = vor.u32 %v2541_v6, %v2349_v7 }
 0x1fa   :  { %v3209_v15 = vmax.f32 %v578_v14, 0.0  ;;  %v2339_v14 = vld [vmem:[#allocation12 + $0x40] sm:$0xf] }
 0x1fc   :  { %v629_v18 = vmul.f32 %v3209_v15, %v3209_v15 }
 0x1fe   :  { %648 = vadd.xlane.f32.xlu1 %v629_v18  ;;  %v2540_v18 = vld [vmem:[#allocation12 + $0x44] sm:$0xf0] }
 0x1ff   :  { %v580_v16 = vpop.f32.mrf.mxu2 }
 0x200   :  { %v581_v17 = vadd.f32 %v580_v16, %v3143_v35 }
 0x202   :  { %v3214_v20 = vmax.f32 %v581_v17, 0.0  ;;  %v2340_v17 = vor.u32 %v2540_v18, %v2339_v14 }
 0x204   :  { %v630_v24 = vmul.f32 %v3214_v20, %v3214_v20 }
 0x206   :  { %650 = vadd.xlane.f32.xlu2 %v630_v24  ;;  %v2341_v24 = vld [vmem:[#allocation12 + $0x48] sm:$0xf0] }
 0x207   :  { %v582_v21 = vpop.f32.mrf.mxu2 }
 0x208   :  { %v583_v22 = vadd.f32 %v582_v21, %v3148_v40 }
 0x20a   :  { %v3219_v23 = vmax.f32 %v583_v22, 0.0 }
 0x20c   :  { %v631_v29 = vmul.f32 %v3219_v23, %v3219_v23 }
 0x20e   :  { %652 = vadd.xlane.f32.xlu2 %v631_v29 }
 0x20f   :  { %v585_v26 = vpop.f32.mrf.mxu2 }
 0x210   :  { %v586_v27 = vadd.f32 %v585_v26, %v3151_v46  ;;  %v2331_v26 = vld [vmem:[#allocation12 + $0x30] sm:$0xf] }
 0x212   :  { %v3224_v28 = vmax.f32 %v586_v27, 0.0  ;;  %v2538_v27 = vld [vmem:[#allocation12 + $0x34] sm:$0xf0] }
 0x214   :  { %v632_v35 = vmul.f32 %v3224_v28, %v3224_v28 }
 0x216   :  { %654 = vadd.xlane.f32.xlu0 %v632_v35  ;;  %v2332_v35 = vor.u32 %v2538_v27, %v2331_v26 }
 0x217   :  { %v587_v30 = vpop.f32.mrf.mxu2 }
 0x218   :  { %v588_v31 = vadd.f32 %v587_v30, %v3156_v51  ;;  %v2537_v30 = vld [vmem:[#allocation12 + $0x34] sm:$0xf] }
 0x21a   :  { %v3229_v33 = vmax.f32 %v588_v31, 0.0  ;;  %v2333_v31 = vld [vmem:[#allocation12 + $0x38] sm:$0xf0] }
 0x21c   :  { %v633_v40 = vmul.f32 %v3229_v33, %v3229_v33 }
 0x21e   :  { %656 = vadd.xlane.f32.xlu1 %v633_v40 }
 0x21f   :  { %v590_v34 = vpop.f32.mrf.mxu2 }
 0x220   :  { %v591_v36 = vadd.f32 %v590_v34, %v3159_v57  ;;  %v2336_v34 = vor.u32 %v2537_v30, %v2333_v31 }
 0x222   :  { %v3234_v37 = vmax.f32 %v591_v36, 0.0  ;;  %v2323_v36 = vld [vmem:[#allocation12 + $0x20] sm:$0xf] }
 0x224   :  { %v634_v46 = vmul.f32 %v3234_v37, %v3234_v37 }
 0x226   :  { %658 = vadd.xlane.f32.xlu2 %v634_v46  ;;  %v2536_v46 = vld [vmem:[#allocation12 + $0x24] sm:$0xf0] }
 0x227   :  { %v592_v39 = vpop.f32.mrf.mxu2 }
 0x228   :  { %v593_v41 = vadd.f32 %v592_v39, %v3164_v62  ;;  %v2363_v62 = vld [vmem:[#allocation12 + $0x70] sm:$0xf] }
 0x229   :  { %v2364_v49 = vor.u32 %v2546_v9, %v2363_v62  ;;  %v2533_v9 = vld [vmem:[#allocation12 + $0x14] sm:$0xf] }
 0x22a   :  { %v3239_v42 = vmax.f32 %v593_v41, 0.0  ;;  %v2324_v41 = vor.u32 %v2536_v46, %v2323_v36 }
 0x22b   :  { %1037 = vmatpush.bf16.msra.mxu3 %v2364_v49  ;;  %v2317_v49 = vld [vmem:[#allocation12 + $0x18] sm:$0xf0] }
 0x22c   :  { %v635_v51 = vmul.f32 %v3239_v42, %v3239_v42 }
 0x22e   :  { %660 = vadd.xlane.f32.xlu0 %v635_v51  ;;  %v2325_v51 = vld [vmem:[#allocation12 + $0x28] sm:$0xf0] }
 0x22f   :  { %v595_v43 = vpop.f32.mrf.mxu2  ;;  %1038 = vmatpush.bf16.msra.mxu3 %v2356_v59 }
 0x230   :  { %v596_v44 = vadd.f32 %v595_v43, %v3167_v4  ;;  %v2368_v4 = vor.u32 %v2545_v50, %v2365_v52  ;;  %v2320_v52 = vor.u32 %v2533_v9, %v2317_v49 }
 0x232   :  { %v3244_v45 = vmax.f32 %v596_v44, 0.0  ;;  %1086 = vmatpush.bf16.msrb.mxu0 %v2368_v4  ;;  %v2532_v4 = vld [vmem:[#allocation12 + $0x4] sm:$0xf0] }
 0x233   :  { %1039 = vmatpush.bf16.msra.mxu3 %v2348_v5 }
 0x234   :  { %v636_v57 = vmul.f32 %v3244_v45, %v3244_v45 }
 0x236   :  { %662 = vadd.xlane.f32.xlu1 %v636_v57 }
 0x237   :  { %v597_v47 = vpop.f32.mrf.mxu2  ;;  %1040 = vmatpush.bf16.msra.mxu3 %v2340_v17 }
 0x238   :  { %v598_v48 = vadd.f32 %v597_v47, %v3172_v10  ;;  %v2357_v10 = vld [vmem:[#allocation12 + $0x68] sm:$0xf0]  ;;  %v2315_v47 = vld [vmem:[#allocation12 + $0x10] sm:$0xf] }
 0x239   :  { %v2360_v61 = vor.u32 %v2543_v56, %v2357_v10  ;;  %v2309_v56 = vld [vmem:[#allocation12 + $0x8] sm:$0xf0] }
 0x23a   :  { %v3249_v13 = vmax.f32 %v598_v48, 0.0  ;;  %v2534_v48 = vld [vmem:[#allocation12 + $0x14] sm:$0xf0] }
 0x23b   :  { %1087 = vmatpush.bf16.msrb.mxu0 %v2360_v61  ;;  %1041 = vmatpush.bf16.msra.mxu3 %v2332_v35  ;;  %v2316_v62 = vor.u32 %v2534_v48, %v2315_v47 }
 0x23c   :  { %v637_v53 = vmul.f32 %v3249_v13, %v3249_v13 }
 0x23e   :  { %664 = vadd.xlane.f32.xlu2 %v637_v53  ;;  %v2307_v53 = vld [vmem:[#allocation12] sm:$0xf] }
 0x23f   :  { %v600_v58 = vpop.f32.mrf.mxu2  ;;  %1088 = vmatpush.bf16.msrb.mxu0 %v2352_v11  ;;  %1042 = vmatpush.bf16.msra.mxu3 %v2324_v41  ;;  %v2308_v55 = vor.u32 %v2532_v4, %v2307_v53 }
 0x240   :  { %v601_v60 = vadd.f32 %v600_v58, %v3175_v19  ;;  %v2539_v19 = vld [vmem:[#allocation12 + $0x44] sm:$0xf] }
 0x241   :  { %v2344_v22 = vor.u32 %v2539_v19, %v2341_v24 }
 0x242   :  { %v3254_v0 = vmax.f32 %v601_v60, 0.0 }
 0x243   :  { %1089 = vmatpush.bf16.msrb.mxu0 %v2344_v22  ;;  %1043 = vmatpush.bf16.msra.mxu3 %v2316_v62 }
 0x244   :  { %v638_v12 = vmul.f32 %v3254_v0, %v3254_v0 }
 0x246   :  { %666 = vadd.xlane.f32.xlu0 %v638_v12 }
 0x247   :  { %v602_v16 = vpop.f32.mrf.mxu2  ;;  %1090 = vmatpush.bf16.msrb.mxu0 %v2336_v34  ;;  %1044 = vmatpush.bf16.msra.mxu3 %v2308_v55 }
 0x248   :  { %v603_v21 = vadd.f32 %v602_v16, %v3180_v25  ;;  %v2535_v25 = vld [vmem:[#allocation12 + $0x24] sm:$0xf] }
 0x249   :  { %v2328_v44 = vor.u32 %v2535_v25, %v2325_v51 }
 0x24a   :  { %v3259_v29 = vmax.f32 %v603_v21, 0.0 }
 0x24b   :  { %1091 = vmatpush.bf16.msrb.mxu0 %v2328_v44 }
 0x24c   :  { %v639_v40 = vmul.f32 %v3259_v29, %v3259_v29 }
 0x24e   :  { %668 = vadd.xlane.f32.xlu1 %v639_v40 }
 0x24f   :  { %v605_v39 = vpop.f32.mrf.mxu2  ;;  %1092 = vmatpush.bf16.msrb.mxu0 %v2320_v52 }
 0x250   :  { %v606_v43 = vadd.f32 %v605_v39, %v3183_v32  ;;  %v2531_v32 = vld [vmem:[#allocation12 + $0x4] sm:$0xf] }
 0x251   :  { %v2312_v59 = vor.u32 %v2531_v32, %v2309_v56 }
 0x252   :  { %v3264_v57 = vmax.f32 %v606_v43, 0.0 }
 0x253   :  { %1093 = vmatpush.bf16.msrb.mxu0 %v2312_v59 }
 0x254   :  { %v640_v50 = vmul.f32 %v3264_v57, %v3264_v57 }
 0x256   :  { %670 = vadd.xlane.f32.xlu2 %v640_v50 }
 0x257   :  { %v607_v54 = vpop.f32.mrf.mxu2 }
 0x258   :  { %v608_v58 = vadd.f32 %v607_v54, %v3188_v38 }
 0x259   :  { %v643_v10 = vpop.xlane.xlu0 %642 }
 0x25a   :  { %v3269_v60 = vmax.f32 %v608_v58, 0.0  ;;  %v674_v61 = vmax.f32 %v643_v10, 1e-24 }
 0x25c   :  { %2684 = vrsqrt.f32 %v674_v61  ;;  %v641_v1 = vmul.f32 %v3269_v60, %v3269_v60  ;;  %vm696_vm1 = vweird.f32 %v674_v61 }
 0x25e   :  { %672 = vadd.xlane.f32.xlu0 %v641_v1 }
 0x261   :  { %v645_v2 = vpop.xlane.xlu0 %644 }
 0x262   :  { %v2685_v5 = vpop.eup %2684  ;;  %v675_v6 = vmax.f32 %v645_v2, 1e-24 }
 0x263   :  { %v691_v7 = vmul.f32 %v2685_v5, %v674_v61  ;;  %vm697_vm0 = vweird.f32 %v2685_v5 }
 0x264   :  { %2686 = vrsqrt.f32 %v675_v6  ;;  %vm698_vm2 = vmor %vm696_vm1, %vm697_vm0  ;;  %vm706_vm4 = vweird.f32 %v675_v6 }
 0x265   :  { %v692_v12 = vmul.f32 %v2685_v5, %v691_v7 }
 0x267   :  { %v693_v11 = vmul.f32 0.5, %v692_v12 }
 0x269   :  { %v694_v38 = vsub.f32 1.5, %v693_v11  ;;  %v647_v14 = vpop.xlane.xlu1 %646 }
 0x26a   :  { %v2687_v18 = vpop.eup %2686  ;;  %v676_v19 = vmax.f32 %v647_v14, 1e-24 }
 0x26b   :  { %v701_v16 = vmul.f32 %v2687_v18, %v675_v6  ;;  %v695_v24 = vmul.f32 %v2685_v5, %v694_v38  ;;  %vm707_vm3 = vweird.f32 %v2687_v18 }
 0x26c   :  { %2688 = vrsqrt.f32 %v676_v19  ;;  %vm708_vm5 = vmor %vm706_vm4, %vm707_vm3  ;;  %vm716_vm7 = vweird.f32 %v676_v19 }
 0x26d   :  { %v702_v17 = vmul.f32 %v2687_v18, %v701_v16  ;;  %v699_v27 = vsel %vm698_vm2, %v2685_v5, %v695_v24 }
 0x26e   :  { %v850_v34 = vmul.f32 %v699_v27, %v3194_v63 }
 0x26f   :  { %v703_v21 = vmul.f32 0.5, %v702_v17 }
 0x270   :  { %v898_v41 = vmax.f32 %v850_v34, 0.0 }
 0x271   :  { %v704_v22 = vsub.f32 1.5, %v703_v21  ;;  %v649_v26 = vpop.xlane.xlu1 %648 }
 0x272   :  { %v2689_v35 = vpop.eup %2688  ;;  %v677_v30 = vmax.f32 %v649_v26, 1e-24 }
 0x273   :  { %v711_v31 = vmul.f32 %v2689_v35, %v676_v19  ;;  %v705_v40 = vmul.f32 %v2687_v18, %v704_v22  ;;  %vm717_vm6 = vweird.f32 %v2689_v35 }
 0x274   :  { %2690 = vrsqrt.f32 %v677_v30  ;;  %vm718_vm8 = vmor %vm716_vm7, %vm717_vm6  ;;  %vm726_vm10 = vweird.f32 %v677_v30 }
 0x275   :  { %v712_v36 = vmul.f32 %v2689_v35, %v711_v31  ;;  %v709_v46 = vsel %vm708_vm5, %v2687_v18, %v705_v40 }
 0x276   :  { %v851_v25 = vmul.f32 %v709_v46, %v3199_v3 }
 0x277   :  { %v713_v39 = vmul.f32 0.5, %v712_v36 }
 0x278   :  { %v899_v51 = vmax.f32 %v851_v25, 0.0 }
 0x279   :  { %v714_v43 = vsub.f32 1.5, %v713_v39  ;;  %v651_v44 = vpop.xlane.xlu2 %650 }
 0x27a   :  { %v2691_v47 = vpop.eup %2690  ;;  %v678_v48 = vmax.f32 %v651_v44, 1e-24  ;;  %v944_v62 = vpack.c.bf16 %v899_v51, %v898_v41 }
 0x27b   :  { %v721_v9 = vmul.f32 %v2691_v47, %v677_v30  ;;  %v715_v50 = vmul.f32 %v2689_v35, %v714_v43  ;;  %vm727_vm9 = vweird.f32 %v2691_v47 }
 0x27c   :  { %2692 = vrsqrt.f32 %v678_v48  ;;  %1045 = vmatmul.bf16.vlgmr.msra.gmra.mxu3 %v944_v62  ;;  %1094 = vmatmul.bf16.vlgmr.msrb.gmra.mxu0 %v944_v62  ;;  %vm728_vm11 = vmor %vm726_vm10, %vm727_vm9  ;;  %vm736_vm13 = vweird.f32 %v678_v48 }
 0x27d   :  { %v722_v49 = vmul.f32 %v2691_v47, %v721_v9  ;;  %v719_v53 = vsel %vm718_vm8, %v2689_v35, %v715_v50 }
 0x27e   :  { %v852_v56 = vmul.f32 %v719_v53, %v3204_v8 }
 0x27f   :  { %v723_v63 = vmul.f32 0.5, %v722_v49 }
 0x280   :  { %v900_v1 = vmax.f32 %v852_v56, 0.0 }
 0x281   :  { %v724_v52 = vsub.f32 1.5, %v723_v63  ;;  %v653_v3 = vpop.xlane.xlu2 %652 }
 0x282   :  { %v2693_v4 = vpop.eup %2692  ;;  %v679_v32 = vmax.f32 %v653_v3, 1e-24 }
 0x283   :  { %v731_v54 = vmul.f32 %v2693_v4, %v678_v48  ;;  %v725_v55 = vmul.f32 %v2691_v47, %v724_v52  ;;  %vm737_vm12 = vweird.f32 %v2693_v4 }
 0x284   :  { %2694 = vrsqrt.f32 %v679_v32  ;;  %vm738_vm14 = vmor %vm736_vm13, %vm737_vm12  ;;  %vm746_vm0 = vweird.f32 %v679_v32 }
 0x285   :  { %v732_v58 = vmul.f32 %v2693_v4, %v731_v54  ;;  %v729_v59 = vsel %vm728_vm11, %v2691_v47, %v725_v55 }
 0x286   :  { %v853_v10 = vmul.f32 %v729_v59, %v3209_v15 }
 0x287   :  { %v733_v61 = vmul.f32 0.5, %v732_v58 }
 0x288   :  { %v901_v2 = vmax.f32 %v853_v10, 0.0 }
 0x289   :  { %v734_v5 = vsub.f32 1.5, %v733_v61  ;;  %v655_v6 = vpop.xlane.xlu0 %654 }
 0x28a   :  { %v2695_v7 = vpop.eup %2694  ;;  %v680_v12 = vmax.f32 %v655_v6, 1e-24  ;;  %v945_v11 = vpack.c.bf16 %v901_v2, %v900_v1 }
 0x28b   :  { %v741_v38 = vmul.f32 %v2695_v7, %v679_v32  ;;  %v735_v18 = vmul.f32 %v2693_v4, %v734_v5  ;;  %vm747_vm15 = vweird.f32 %v2695_v7 }
 0x28c   :  { %2696 = vrsqrt.f32 %v680_v12  ;;  %1050 = vmatmul.bf16.gmra.mxu3 %v945_v11  ;;  %1099 = vmatmul.bf16.gmra.mxu0 %v945_v11  ;;  %vm748_vm1 = vmor %vm746_vm0, %vm747_vm15  ;;  %vm756_vm3 = vweird.f32 %v680_v12 }
 0x28d   :  { %v742_v14 = vmul.f32 %v2695_v7, %v741_v38  ;;  %v739_v16 = vsel %vm738_vm14, %v2693_v4, %v735_v18 }
 0x28e   :  { %v854_v26 = vmul.f32 %v739_v16, %v3214_v20 }
 0x28f   :  { %v743_v8 = vmul.f32 0.5, %v742_v14 }
 0x290   :  { %v902_v40 = vmax.f32 %v854_v26, 0.0 }
 0x291   :  { %v744_v19 = vsub.f32 1.5, %v743_v8  ;;  %v657_v15 = vpop.xlane.xlu1 %656 }
 0x292   :  { %v2697_v17 = vpop.eup %2696  ;;  %v681_v24 = vmax.f32 %v657_v15, 1e-24 }
 0x293   :  { %v751_v21 = vmul.f32 %v2697_v17, %v680_v12  ;;  %v745_v22 = vmul.f32 %v2695_v7, %v744_v19  ;;  %vm757_vm2 = vweird.f32 %v2697_v17 }
 0x294   :  { %2698 = vrsqrt.f32 %v681_v24  ;;  %vm758_vm4 = vmor %vm756_vm3, %vm757_vm2  ;;  %vm766_vm6 = vweird.f32 %v681_v24 }
 0x295   :  { %v752_v27 = vmul.f32 %v2697_v17, %v751_v21  ;;  %v749_v35 = vsel %vm748_vm1, %v2695_v7, %v745_v22 }
 0x296   :  { %v855_v30 = vmul.f32 %v749_v35, %v3219_v23 }
 0x297   :  { %v753_v31 = vmul.f32 0.5, %v752_v27 }
 0x298   :  { %v903_v34 = vmax.f32 %v855_v30, 0.0 }
 0x299   :  { %v754_v36 = vsub.f32 1.5, %v753_v31  ;;  %v659_v46 = vpop.xlane.xlu2 %658 }
 0x29a   :  { %v2699_v25 = vpop.eup %2698  ;;  %v682_v39 = vmax.f32 %v659_v46, 1e-24  ;;  %v946_v41 = vpack.c.bf16 %v903_v34, %v902_v40 }
 0x29b   :  { %v761_v51 = vmul.f32 %v2699_v25, %v681_v24  ;;  %v755_v44 = vmul.f32 %v2697_v17, %v754_v36  ;;  %vm767_vm5 = vweird.f32 %v2699_v25 }
 0x29c   :  { %2700 = vrsqrt.f32 %v682_v39  ;;  %1055 = vmatmul.bf16.gmra.mxu3 %v946_v41  ;;  %1104 = vmatmul.bf16.gmra.mxu0 %v946_v41  ;;  %vm768_vm7 = vmor %vm766_vm6, %vm767_vm5  ;;  %vm776_vm9 = vweird.f32 %v682_v39 }
 0x29d   :  { %v762_v43 = vmul.f32 %v2699_v25, %v761_v51  ;;  %v759_v48 = vsel %vm758_vm4, %v2697_v17, %v755_v44 }
 0x29e   :  { %v856_v63 = vmul.f32 %v759_v48, %v3224_v28 }
 0x29f   :  { %v763_v20 = vmul.f32 0.5, %v762_v43 }
 0x2a0   :  { %v904_v32 = vmax.f32 %v856_v63, 0.0 }
 0x2a1   :  { %v764_v47 = vsub.f32 1.5, %v763_v20  ;;  %v661_v23 = vpop.xlane.xlu0 %660 }
 0x2a2   :  { %v2701_v62 = vpop.eup %2700  ;;  %v683_v9 = vmax.f32 %v661_v23, 1e-24 }
 0x2a3   :  { %v771_v49 = vmul.f32 %v2701_v62, %v682_v39  ;;  %v765_v50 = vmul.f32 %v2699_v25, %v764_v47  ;;  %vm777_vm8 = vweird.f32 %v2701_v62 }
 0x2a4   :  { %2702 = vrsqrt.f32 %v683_v9  ;;  %vm778_vm10 = vmor %vm776_vm9, %vm777_vm8  ;;  %vm786_vm12 = vweird.f32 %v683_v9 }
 0x2a5   :  { %v772_v52 = vmul.f32 %v2701_v62, %v771_v49  ;;  %v769_v3 = vsel %vm768_vm7, %v2699_v25, %v765_v50 }
 0x2a6   :  { %v857_v53 = vmul.f32 %v769_v3, %v3229_v33 }
 0x2a7   :  { %v773_v4 = vmul.f32 0.5, %v772_v52 }
 0x2a8   :  { %v905_v54 = vmax.f32 %v857_v53, 0.0 }
 0x2a9   :  { %v774_v55 = vsub.f32 1.5, %v773_v4  ;;  %v663_v56 = vpop.xlane.xlu1 %662 }
 0x2aa   :  { %v2703_v58 = vpop.eup %2702  ;;  %v684_v59 = vmax.f32 %v663_v56, 1e-24  ;;  %v947_v10 = vpack.c.bf16 %v905_v54, %v904_v32 }
 0x2ab   :  { %v781_v61 = vmul.f32 %v2703_v58, %v683_v9  ;;  %v775_v2 = vmul.f32 %v2701_v62, %v774_v55  ;;  %vm787_vm11 = vweird.f32 %v2703_v58 }
 0x2ac   :  { %2704 = vrsqrt.f32 %v684_v59  ;;  %1060 = vmatmul.bf16.gmra.mxu3 %v947_v10  ;;  %1109 = vmatmul.bf16.gmra.mxu0 %v947_v10  ;;  %vm788_vm13 = vmor %vm786_vm12, %vm787_vm11  ;;  %vm796_vm15 = vweird.f32 %v684_v59 }
 0x2ad   :  { %v782_v1 = vmul.f32 %v2703_v58, %v781_v61  ;;  %v779_v6 = vsel %vm778_vm10, %v2701_v62, %v775_v2 }
 0x2ae   :  { %v858_v14 = vmul.f32 %v779_v6, %v3234_v37 }
 0x2af   :  { %v783_v28 = vmul.f32 0.5, %v782_v1 }
 0x2b0   :  { %v906_v16 = vmax.f32 %v858_v14, 0.0 }
 0x2b1   :  { %v784_v5 = vsub.f32 1.5, %v783_v28  ;;  %v665_v33 = vpop.xlane.xlu2 %664 }
 0x2b2   :  { %v2705_v7 = vpop.eup %2704  ;;  %v685_v12 = vmax.f32 %v665_v33, 1e-24 }
 0x2b3   :  { %v791_v11 = vmul.f32 %v2705_v7, %v684_v59  ;;  %v785_v38 = vmul.f32 %v2703_v58, %v784_v5  ;;  %vm797_vm14 = vweird.f32 %v2705_v7 }
 0x2b4   :  { %2706 = vrsqrt.f32 %v685_v12  ;;  %vm798_vm0 = vmor %vm796_vm15, %vm797_vm14  ;;  %vm806_vm2 = vweird.f32 %v685_v12 }
 0x2b5   :  { %v792_v18 = vmul.f32 %v2705_v7, %v791_v11  ;;  %v789_v8 = vsel %vm788_vm13, %v2703_v58, %v785_v38 }
 0x2b6   :  { %v859_v19 = vmul.f32 %v789_v8, %v3239_v42 }
 0x2b7   :  { %v793_v15 = vmul.f32 0.5, %v792_v18 }
 0x2b8   :  { %v907_v17 = vmax.f32 %v859_v19, 0.0 }
 0x2b9   :  { %v794_v24 = vsub.f32 1.5, %v793_v15  ;;  %v667_v21 = vpop.xlane.xlu0 %666 }
 0x2ba   :  { %v2707_v22 = vpop.eup %2706  ;;  %v686_v26 = vmax.f32 %v667_v21, 1e-24  ;;  %v948_v27 = vpack.c.bf16 %v907_v17, %v906_v16 }
 0x2bb   :  { %v801_v35 = vmul.f32 %v2707_v22, %v685_v12  ;;  %v795_v31 = vmul.f32 %v2705_v7, %v794_v24  ;;  %vm807_vm1 = vweird.f32 %v2707_v22  ;;  %v943_v24 = vld [vmem:[%s3650_s5] sm:$0x3] }
 0x2bc   :  { %2708 = vrsqrt.f32 %v686_v26  ;;  %1065 = vmatmul.bf16.gmra.mxu3 %v948_v27  ;;  %1114 = vmatmul.bf16.gmra.mxu0 %v948_v27  ;;  %vm808_vm3 = vmor %vm806_vm2, %vm807_vm1  ;;  %vm816_vm5 = vweird.f32 %v686_v26  ;;  %v3292_v21 = vperm.slane %v943_v24, 1 }
 0x2bd   :  { %v802_v30 = vmul.f32 %v2707_v22, %v801_v35  ;;  %v799_v34 = vsel %vm798_vm0, %v2705_v7, %v795_v31  ;;  %v3297_v35 = vperm.slane %v943_v24, 0 }
 0x2be   :  { %v860_v41 = vmul.f32 %v799_v34, %v3244_v45 }
 0x2bf   :  { %v803_v37 = vmul.f32 0.5, %v802_v30 }
 0x2c0   :  { %v908_v47 = vmax.f32 %v860_v41, 0.0 }
 0x2c1   :  { %v804_v40 = vsub.f32 1.5, %v803_v37  ;;  %v669_v42 = vpop.xlane.xlu1 %668 }
 0x2c2   :  { %v2709_v36 = vpop.eup %2708  ;;  %v687_v46 = vmax.f32 %v669_v42, 1e-24 }
 0x2c3   :  { %v811_v25 = vmul.f32 %v2709_v36, %v686_v26  ;;  %v805_v39 = vmul.f32 %v2707_v22, %v804_v40  ;;  %vm817_vm4 = vweird.f32 %v2709_v36 }
 0x2c4   :  { %2710 = vrsqrt.f32 %v687_v46  ;;  %vm818_vm6 = vmor %vm816_vm5, %vm817_vm4  ;;  %vm826_vm8 = vweird.f32 %v687_v46 }
 0x2c5   :  { %v812_v51 = vmul.f32 %v2709_v36, %v811_v25  ;;  %v809_v43 = vsel %vm808_vm3, %v2707_v22, %v805_v39 }
 0x2c6   :  { %v861_v44 = vmul.f32 %v809_v43, %v3249_v13 }
 0x2c7   :  { %v813_v20 = vmul.f32 0.5, %v812_v51 }
 0x2c8   :  { %v909_v23 = vmax.f32 %v861_v44, 0.0 }
 0x2c9   :  { %v814_v48 = vsub.f32 1.5, %v813_v20  ;;  %v671_v62 = vpop.xlane.xlu2 %670 }
 0x2ca   :  { %v2711_v9 = vpop.eup %2710  ;;  %v688_v49 = vmax.f32 %v671_v62, 1e-24  ;;  %v949_v50 = vpack.c.bf16 %v909_v23, %v908_v47 }
 0x2cb   :  { %v821_v63 = vmul.f32 %v2711_v9, %v687_v46  ;;  %v815_v3 = vmul.f32 %v2709_v36, %v814_v48  ;;  %vm827_vm7 = vweird.f32 %v2711_v9 }
 0x2cc   :  { %2712 = vrsqrt.f32 %v688_v49  ;;  %1070 = vmatmul.bf16.gmra.mxu3 %v949_v50  ;;  %1119 = vmatmul.bf16.gmra.mxu0 %v949_v50  ;;  %vm828_vm9 = vmor %vm826_vm8, %vm827_vm7  ;;  %vm836_vm11 = vweird.f32 %v688_v49 }
 0x2cd   :  { %v822_v52 = vmul.f32 %v2711_v9, %v821_v63  ;;  %v819_v4 = vsel %vm818_vm6, %v2709_v36, %v815_v3 }
 0x2ce   :  { %v862_v58 = vmul.f32 %v819_v4, %v3254_v0 }
 0x2cf   :  { %v823_v45 = vmul.f32 0.5, %v822_v52 }
 0x2d0   :  { %v910_v2 = vmax.f32 %v862_v58, 0.0 }
 0x2d1   :  { %v824_v53 = vsub.f32 1.5, %v823_v45  ;;  %v673_v13 = vpop.xlane.xlu0 %672 }
 0x2d2   :  { %v2713_v32 = vpop.eup %2712  ;;  %v689_v54 = vmax.f32 %v673_v13, 1e-24 }
 0x2d3   :  { %v825_v55 = vmul.f32 %v2711_v9, %v824_v53  ;;  %v831_v56 = vmul.f32 %v2713_v32, %v688_v49  ;;  %vm837_vm10 = vweird.f32 %v2713_v32 }
 0x2d4   :  { %2714 = vrsqrt.f32 %v689_v54  ;;  %vm838_vm12 = vmor %vm836_vm11, %vm837_vm10  ;;  %vm846_vm14 = vweird.f32 %v689_v54 }
 0x2d5   :  { %v832_v59 = vmul.f32 %v2713_v32, %v831_v56  ;;  %v829_v10 = vsel %vm828_vm9, %v2711_v9, %v825_v55 }
 0x2d6   :  { %v863_v61 = vmul.f32 %v829_v10, %v3259_v29 }
 0x2d7   :  { %v833_v1 = vmul.f32 0.5, %v832_v59 }
 0x2d8   :  { %v911_v28 = vmax.f32 %v863_v61, 0.0 }
 0x2d9   :  { %v834_v5 = vsub.f32 1.5, %v833_v1 }
 0x2da   :  { %v2715_v33 = vpop.eup %2714  ;;  %v950_v6 = vpack.c.bf16 %v911_v28, %v910_v2 }
 0x2db   :  { %v841_v7 = vmul.f32 %v2715_v33, %v689_v54  ;;  %v835_v12 = vmul.f32 %v2713_v32, %v834_v5  ;;  %vm847_vm13 = vweird.f32 %v2715_v33 }
 0x2dc   :  { %1075 = vmatmul.bf16.gmra.mxu3 %v950_v6  ;;  %1124 = vmatmul.bf16.gmra.mxu0 %v950_v6  ;;  %vm848_vm15 = vmor %vm846_vm14, %vm847_vm13 }
 0x2dd   :  { %v842_v11 = vmul.f32 %v2715_v33, %v841_v7  ;;  %v839_v14 = vsel %vm838_vm12, %v2713_v32, %v835_v12 }
 0x2de   :  { %v864_v29 = vmul.f32 %v839_v14, %v3264_v57 }
 0x2df   :  { %v843_v38 = vmul.f32 0.5, %v842_v11 }
 0x2e0   :  { %v912_v15 = vmax.f32 %v864_v29, 0.0 }
 0x2e1   :  { %v844_v0 = vsub.f32 1.5, %v843_v38 }
 0x2e3   :  { %v845_v18 = vmul.f32 %v2715_v33, %v844_v0 }
 0x2e5   :  { %v849_v8 = vsel %vm848_vm15, %v2715_v33, %v845_v18 }
 0x2e6   :  { %v865_v19 = vmul.f32 %v849_v8, %v3269_v60 }
 0x2e8   :  { %v913_v16 = vmax.f32 %v865_v19, 0.0 }
 0x2ea   :  { %v951_v17 = vpack.c.bf16 %v913_v16, %v912_v15 }
 0x2ec   :  { %1080 = vmatmul.bf16.gmra.mxu3 %v951_v17  ;;  %1129 = vmatmul.bf16.gmra.mxu0 %v951_v17 }
 0x2f9   :  { %v1095_v22 = vpop.f32.mrf.mxu0 }
 0x2fa   :  { %v3295_v26 = vadd.f32 %v1095_v22, %v3292_v21 }
 0x2ff   :  { %v1046_v27 = vpop.f32.mrf.mxu3 }
 0x300   :  { %v1047_v30 = vadd.f32 %v1046_v27, %v3297_v35 }
 0x301   :  { %v1097_v57 = vpop.f32.mrf.mxu0 }
 0x302   :  { %v3300_v60 = vadd.f32 %v1097_v57, %v3292_v21  ;;  %v1135_v42 = vmax.f32 %v1047_v30, 0.0 }
 0x307   :  { %v1048_v31 = vpop.f32.mrf.mxu3 }
 0x308   :  { %v1049_v37 = vadd.f32 %v1048_v31, %v3297_v35 }
 0x309   :  { %v1100_v40 = vpop.f32.mrf.mxu0 }
 0x30a   :  { %v1136_v34 = vmax.f32 %v1049_v37, 0.0  ;;  %v3305_v36 = vadd.f32 %v1100_v40, %v3292_v21 }
 0x30c   :  { %v2622_v46 = vpack.c.bf16 %v1136_v34, %v1135_v42 }
 0x30e   :  { %2623 = vst [vmem:[#allocation4 + $0x30] sm:$0xff] %v2622_v46  }
 0x30f   :  { %v1051_v25 = vpop.f32.mrf.mxu3 }
 0x310   :  { %v1052_v51 = vadd.f32 %v1051_v25, %v3297_v35 }
 0x311   :  { %v1102_v39 = vpop.f32.mrf.mxu0 }
 0x312   :  { %v3308_v41 = vadd.f32 %v1102_v39, %v3292_v21  ;;  %v1137_v47 = vmax.f32 %v1052_v51, 0.0 }
 0x317   :  { %v1053_v43 = vpop.f32.mrf.mxu3 }
 0x318   :  { %v1054_v44 = vadd.f32 %v1053_v43, %v3297_v35 }
 0x319   :  { %v1105_v20 = vpop.f32.mrf.mxu0 }
 0x31a   :  { %v1138_v23 = vmax.f32 %v1054_v44, 0.0  ;;  %v3313_v48 = vadd.f32 %v1105_v20, %v3292_v21 }
 0x31c   :  { %v2627_v62 = vpack.c.bf16 %v1138_v23, %v1137_v47 }
 0x31e   :  { %2666 = vst [vmem:[#allocation4] sm:$0xff] %v2627_v62  }
 0x31f   :  { %v1056_v9 = vpop.f32.mrf.mxu3 }
 0x320   :  { %v1057_v63 = vadd.f32 %v1056_v9, %v3297_v35 }
 0x321   :  { %v1107_v49 = vpop.f32.mrf.mxu0 }
 0x322   :  { %v3316_v50 = vadd.f32 %v1107_v49, %v3292_v21  ;;  %v1139_v53 = vmax.f32 %v1057_v63, 0.0 }
 0x327   :  { %v1058_v52 = vpop.f32.mrf.mxu3 }
 0x328   :  { %v1059_v3 = vadd.f32 %v1058_v52, %v3297_v35 }
 0x329   :  { %v1110_v45 = vpop.f32.mrf.mxu0 }
 0x32a   :  { %v1140_v13 = vmax.f32 %v1059_v3, 0.0  ;;  %v3321_v4 = vadd.f32 %v1110_v45, %v3292_v21 }
 0x32c   :  { %v2632_v32 = vpack.c.bf16 %v1140_v13, %v1139_v53 }
 0x32e   :  { %2667 = vst [vmem:[#allocation4 + $0x18] sm:$0xff] %v2632_v32  }
 0x32f   :  { %v1061_v54 = vpop.f32.mrf.mxu3 }
 0x330   :  { %v1062_v58 = vadd.f32 %v1061_v54, %v3297_v35 }
 0x331   :  { %v1112_v55 = vpop.f32.mrf.mxu0 }
 0x332   :  { %v3324_v56 = vadd.f32 %v1112_v55, %v3292_v21  ;;  %v1141_v1 = vmax.f32 %v1062_v58, 0.0 }
 0x337   :  { %v1063_v59 = vpop.f32.mrf.mxu3 }
 0x338   :  { %v1064_v10 = vadd.f32 %v1063_v59, %v3297_v35 }
 0x339   :  { %v1115_v61 = vpop.f32.mrf.mxu0 }
 0x33a   :  { %v1142_v2 = vmax.f32 %v1064_v10, 0.0  ;;  %v3329_v28 = vadd.f32 %v1115_v61, %v3292_v21 }
 0x33c   :  { %v2637_v5 = vpack.c.bf16 %v1142_v2, %v1141_v1 }
 0x33e   :  { %2668 = vst [vmem:[#allocation4 + $0x10] sm:$0xff] %v2637_v5  }
 0x33f   :  { %v1066_v33 = vpop.f32.mrf.mxu3 }
 0x340   :  { %v1067_v12 = vadd.f32 %v1066_v33, %v3297_v35 }
 0x341   :  { %v1117_v6 = vpop.f32.mrf.mxu0 }
 0x342   :  { %v3332_v7 = vadd.f32 %v1117_v6, %v3292_v21  ;;  %v1143_v14 = vmax.f32 %v1067_v12, 0.0 }
 0x347   :  { %v1068_v11 = vpop.f32.mrf.mxu3 }
 0x348   :  { %v1069_v38 = vadd.f32 %v1068_v11, %v3297_v35 }
 0x349   :  { %v1120_v0 = vpop.f32.mrf.mxu0 }
 0x34a   :  { %v1144_v18 = vmax.f32 %v1069_v38, 0.0  ;;  %v3337_v29 = vadd.f32 %v1120_v0, %v3292_v21 }
 0x34c   :  { %v2642_v8 = vpack.c.bf16 %v1144_v18, %v1143_v14 }
 0x34e   :  { %2669 = vst [vmem:[#allocation4 + $0x8] sm:$0xff] %v2642_v8  }
 0x34f   :  { %v1071_v19 = vpop.f32.mrf.mxu3 }
 0x350   :  { %v1072_v17 = vadd.f32 %v1071_v19, %v3297_v35 }
 0x351   :  { %v1122_v15 = vpop.f32.mrf.mxu0 }
 0x352   :  { %v3340_v16 = vadd.f32 %v1122_v15, %v3292_v21  ;;  %v1145_v57 = vmax.f32 %v1072_v17, 0.0 }
 0x357   :  { %v1073_v24 = vpop.f32.mrf.mxu3 }
 0x358   :  { %v1074_v22 = vadd.f32 %v1073_v24, %v3297_v35 }
 0x359   :  { %v1125_v27 = vpop.f32.mrf.mxu0 }
 0x35a   :  { %v1146_v30 = vmax.f32 %v1074_v22, 0.0  ;;  %v3345_v31 = vadd.f32 %v1125_v27, %v3292_v21 }
 0x35c   :  { %v2647_v37 = vpack.c.bf16 %v1146_v30, %v1145_v57 }
 0x35e   :  { %2670 = vst [vmem:[#allocation4 + $0x20] sm:$0xff] %v2647_v37  }
 0x35f   :  { %v1076_v40 = vpop.f32.mrf.mxu3 }
 0x360   :  { %v1077_v46 = vadd.f32 %v1076_v40, %v3297_v35 }
 0x361   :  { %v1127_v42 = vpop.f32.mrf.mxu0 }
 0x362   :  { %v3348_v34 = vadd.f32 %v1127_v42, %v3292_v21  ;;  %v1147_v43 = vmax.f32 %v1077_v46, 0.0 }
 0x367   :  { %v1078_v25 = vpop.f32.mrf.mxu3 }
 0x368   :  { %v1079_v39 = vadd.f32 %v1078_v25, %v3297_v35 }
 0x369   :  { %v1130_v51 = vpop.f32.mrf.mxu0 }
 0x36a   :  { %v1148_v44 = vmax.f32 %v1079_v39, 0.0  ;;  %v3353_v20 = vadd.f32 %v1130_v51, %v3292_v21 }
 0x36c   :  { %v2652_v47 = vpack.c.bf16 %v1148_v44, %v1147_v43 }
 0x36e   :  { %2671 = vst [vmem:[#allocation4 + $0x28] sm:$0xff] %v2652_v47  }
 0x36f   :  { %v1081_v23 = vpop.f32.mrf.mxu3 }
 0x370   :  { %v1082_v49 = vadd.f32 %v1081_v23, %v3297_v35 }
 0x371   :  { %v1132_v62 = vpop.f32.mrf.mxu0 }
 0x372   :  { %v3356_v9 = vadd.f32 %v1132_v62, %v3292_v21  ;;  %v1149_v3 = vmax.f32 %v1082_v49, 0.0 }
 0x377   :  { %v1083_v63 = vpop.f32.mrf.mxu3 }
 0x378   :  { %v1084_v52 = vadd.f32 %v1083_v63, %v3297_v35 }
 0x37a   :  { %v1150_v45 = vmax.f32 %v1084_v52, 0.0 }
 0x37c   :  { %v2657_v53 = vpack.c.bf16 %v1150_v45, %v1149_v3 }
 0x37e   :  { %2672 = vst [vmem:[#allocation4 + $0x38] sm:$0xff] %v2657_v53  }
 0x37f   :  { %3014 = dma.done.wait [#allocation3], 1024 }
 0x380   :  { %3015 = vsyncadd [#allocation3], 4294966272  ;;  %v2561_v32 = vld [vmem:[#allocation4 + $0x28] sm:$0xff]  ;;  %v2560_v54 = vld [vmem:[#allocation4 + $0x20] sm:$0xff]  ;;  %s2149_s6 = sshll.u32 %s3655_s10, 4  ;;  %s2150_s6 = int_to_ptr.hbm [resolvable:$true] %s2149_s6 }
 0x381   :  { %v2559_v55 = vld [vmem:[#allocation4 + $0x8] sm:$0xff]  ;;  %v2558_v21 = vld [vmem:[#allocation4 + $0x10] sm:$0xff]  ;;  %v2557_v58 = vld [vmem:[#allocation4 + $0x18] sm:$0xff] }
 0x382   :  { %v2556_v59 = vld [vmem:[#allocation4] sm:$0xff]  ;;  %v2555_v35 = vld [vmem:[#allocation4 + $0x30] sm:$0xff]  ;;  %v2548_v61 = vld [vmem:[#allocation2 + $0x8] sm:$0xff] }
 0x383   :  { %v2547_v10 = vld [vmem:[#allocation2] sm:$0xff]  ;;  %v2549_v1 = vld [vmem:[#allocation2 + $0x10] sm:$0xff]  ;;  %v2550_v2 = vld [vmem:[#allocation2 + $0x18] sm:$0xff] }
 0x384   :  { %v2551_v5 = vld [vmem:[#allocation2 + $0x20] sm:$0xff]  ;;  %v2552_v33 = vld [vmem:[#allocation2 + $0x28] sm:$0xff]  ;;  %v2553_v6 = vld [vmem:[#allocation2 + $0x30] sm:$0xff] }
 0x385   :  { %v2562_v13 = vld [vmem:[#allocation4 + $0x38] sm:$0xff] }
 0x386   :  { %1345 = vmatpush.bf16.msrb.mxu1 %v2562_v13  ;;  %v2554_v12 = vld [vmem:[#allocation2 + $0x38] sm:$0xff] }
 0x38a   :  { %1346 = vmatpush.bf16.msrb.mxu1 %v2561_v32 }
 0x38e   :  { %1347 = vmatpush.bf16.msrb.mxu1 %v2560_v54 }
 0x392   :  { %1348 = vmatpush.bf16.msrb.mxu1 %v2559_v55 }
 0x396   :  { %1349 = vmatpush.bf16.msrb.mxu1 %v2558_v21 }
 0x39a   :  { %1350 = vmatpush.bf16.msrb.mxu1 %v2557_v58 }
 0x39e   :  { %1351 = vmatpush.bf16.msrb.mxu1 %v2556_v59 }
 0x3a2   :  { %1352 = vmatpush.bf16.msrb.mxu1 %v2555_v35 }
 0x3a5   :  { %1353 = vmatmul.bf16.vlgmr.msrb.gmra.mxu1 %v2547_v10  ;;  %v2569_v10 = vld [vmem:[#allocation13 + $0x30] sm:$0xff] }
 0x3b5   :  { %1358 = vmatmul.bf16.gmra.mxu1 %v2548_v61 }
 0x3c5   :  { %1363 = vmatmul.bf16.gmra.mxu1 %v2549_v1  ;;  %v2568_v1 = vld [vmem:[#allocation13 + $0x28] sm:$0xff] }
 0x3d5   :  { %1368 = vmatmul.bf16.gmra.mxu1 %v2550_v2 }
 0x3e5   :  { %1373 = vmatmul.bf16.gmra.mxu1 %v2551_v5  ;;  %v2567_v5 = vld [vmem:[#allocation13 + $0x20] sm:$0xff] }
 0x3f5   :  { %1378 = vmatmul.bf16.gmra.mxu1 %v2552_v33 }
 0x405   :  { %1383 = vmatmul.bf16.gmra.mxu1 %v2553_v6 }
 0x415   :  { %1388 = vmatmul.bf16.gmra.mxu1 %v2554_v12  ;;  %v2566_v12 = vld [vmem:[#allocation13 + $0x18] sm:$0xff] }
 0x422   :  { %v1354_v11 = vpop.f32.mrf.mxu1 }
 0x423   :  { %v1355_v38 = vadd.f32 %v1354_v11, %v3295_v26 }
 0x425   :  { %v3361_v0 = vmax.f32 %v1355_v38, 0.0  ;;  %v2565_v38 = vld [vmem:[#allocation13 + $0x10] sm:$0xff] }
 0x427   :  { %v1410_v14 = vmul.f32 %v3361_v0, %v3361_v0 }
 0x429   :  { %1426 = vadd.xlane.f32.xlu0 %v1410_v14 }
 0x42a   :  { %v1356_v18 = vpop.f32.mrf.mxu1 }
 0x42b   :  { %v1357_v8 = vadd.f32 %v1356_v18, %v3300_v60 }
 0x42d   :  { %v3366_v19 = vmax.f32 %v1357_v8, 0.0  ;;  %v2564_v8 = vld [vmem:[#allocation13 + $0x8] sm:$0xff] }
 0x42f   :  { %v1411_v15 = vmul.f32 %v3366_v19, %v3366_v19 }
 0x431   :  { %1428 = vadd.xlane.f32.xlu0 %v1411_v15 }
 0x432   :  { %v1359_v17 = vpop.f32.mrf.mxu1 }
 0x433   :  { %v1360_v24 = vadd.f32 %v1359_v17, %v3305_v36  ;;  %v2563_v17 = vld [vmem:[#allocation13] sm:$0xff] }
 0x435   :  { %v3371_v22 = vmax.f32 %v1360_v24, 0.0 }
 0x437   :  { %v1412_v26 = vmul.f32 %v3371_v22, %v3371_v22 }
 0x439   :  { %1430 = vadd.xlane.f32.xlu1 %v1412_v26 }
 0x43a   :  { %v1361_v27 = vpop.f32.mrf.mxu1 }
 0x43b   :  { %v1362_v57 = vadd.f32 %v1361_v27, %v3308_v41 }
 0x43d   :  { %v3376_v30 = vmax.f32 %v1362_v57, 0.0 }
 0x43f   :  { %v1413_v60 = vmul.f32 %v3376_v30, %v3376_v30 }
 0x441   :  { %1432 = vadd.xlane.f32.xlu1 %v1413_v60 }
 0x442   :  { %v1364_v37 = vpop.f32.mrf.mxu1 }
 0x443   :  { %v1365_v40 = vadd.f32 %v1364_v37, %v3313_v48 }
 0x445   :  { %v3381_v42 = vmax.f32 %v1365_v40, 0.0 }
 0x447   :  { %v1414_v36 = vmul.f32 %v3381_v42, %v3381_v42 }
 0x449   :  { %1434 = vadd.xlane.f32.xlu2 %v1414_v36 }
 0x44a   :  { %v1366_v46 = vpop.f32.mrf.mxu1 }
 0x44b   :  { %v1367_v25 = vadd.f32 %v1366_v46, %v3316_v50 }
 0x44d   :  { %v3386_v39 = vmax.f32 %v1367_v25, 0.0 }
 0x44f   :  { %v1415_v41 = vmul.f32 %v3386_v39, %v3386_v39 }
 0x451   :  { %1436 = vadd.xlane.f32.xlu2 %v1415_v41 }
 0x452   :  { %v1369_v51 = vpop.f32.mrf.mxu1 }
 0x453   :  { %v1370_v43 = vadd.f32 %v1369_v51, %v3321_v4 }
 0x455   :  { %v3391_v44 = vmax.f32 %v1370_v43, 0.0 }
 0x457   :  { %v1416_v48 = vmul.f32 %v3391_v44, %v3391_v44 }
 0x459   :  { %1438 = vadd.xlane.f32.xlu0 %v1416_v48 }
 0x45a   :  { %v1371_v47 = vpop.f32.mrf.mxu1 }
 0x45b   :  { %v1372_v23 = vadd.f32 %v1371_v47, %v3324_v56 }
 0x45d   :  { %v3396_v62 = vmax.f32 %v1372_v23, 0.0 }
 0x45f   :  { %v1417_v50 = vmul.f32 %v3396_v62, %v3396_v62 }
 0x461   :  { %1440 = vadd.xlane.f32.xlu1 %v1417_v50 }
 0x462   :  { %v1374_v49 = vpop.f32.mrf.mxu1 }
 0x463   :  { %v1375_v63 = vadd.f32 %v1374_v49, %v3329_v28 }
 0x465   :  { %v3401_v52 = vmax.f32 %v1375_v63, 0.0 }
 0x467   :  { %v1418_v4 = vmul.f32 %v3401_v52, %v3401_v52 }
 0x469   :  { %1442 = vadd.xlane.f32.xlu2 %v1418_v4 }
 0x46a   :  { %v1376_v3 = vpop.f32.mrf.mxu1 }
 0x46b   :  { %v1377_v45 = vadd.f32 %v1376_v3, %v3332_v7  ;;  %v2570_v7 = vld [vmem:[#allocation13 + $0x38] sm:$0xff] }
 0x46c   :  { %1774 = vmatpush.bf16.msrb.mxu2 %v2570_v7 }
 0x46d   :  { %v3406_v53 = vmax.f32 %v1377_v45, 0.0 }
 0x46f   :  { %v1419_v56 = vmul.f32 %v3406_v53, %v3406_v53 }
 0x470   :  { %1775 = vmatpush.bf16.msrb.mxu2 %v2569_v10 }
 0x471   :  { %1444 = vadd.xlane.f32.xlu0 %v1419_v56 }
 0x472   :  { %v1379_v13 = vpop.f32.mrf.mxu1 }
 0x473   :  { %v1380_v32 = vadd.f32 %v1379_v13, %v3337_v29 }
 0x474   :  { %1776 = vmatpush.bf16.msrb.mxu2 %v2568_v1 }
 0x475   :  { %v3411_v54 = vmax.f32 %v1380_v32, 0.0 }
 0x477   :  { %v1420_v28 = vmul.f32 %v3411_v54, %v3411_v54 }
 0x478   :  { %1777 = vmatpush.bf16.msrb.mxu2 %v2567_v5 }
 0x479   :  { %1446 = vadd.xlane.f32.xlu1 %v1420_v28 }
 0x47a   :  { %v1381_v55 = vpop.f32.mrf.mxu1 }
 0x47b   :  { %v1382_v21 = vadd.f32 %v1381_v55, %v3340_v16 }
 0x47c   :  { %1778 = vmatpush.bf16.msrb.mxu2 %v2566_v12 }
 0x47d   :  { %v3416_v58 = vmax.f32 %v1382_v21, 0.0 }
 0x47f   :  { %v1421_v59 = vmul.f32 %v3416_v58, %v3416_v58 }
 0x480   :  { %1779 = vmatpush.bf16.msrb.mxu2 %v2565_v38 }
 0x481   :  { %1448 = vadd.xlane.f32.xlu2 %v1421_v59 }
 0x482   :  { %v1384_v35 = vpop.f32.mrf.mxu1 }
 0x483   :  { %v1385_v29 = vadd.f32 %v1384_v35, %v3345_v31 }
 0x484   :  { %1780 = vmatpush.bf16.msrb.mxu2 %v2564_v8 }
 0x485   :  { %v3421_v61 = vmax.f32 %v1385_v29, 0.0 }
 0x487   :  { %v1422_v2 = vmul.f32 %v3421_v61, %v3421_v61 }
 0x488   :  { %1781 = vmatpush.bf16.msrb.mxu2 %v2563_v17 }
 0x489   :  { %1450 = vadd.xlane.f32.xlu0 %v1422_v2 }
 0x48a   :  { %v1386_v16 = vpop.f32.mrf.mxu1 }
 0x48b   :  { %v1387_v33 = vadd.f32 %v1386_v16, %v3348_v34 }
 0x48d   :  { %v3426_v6 = vmax.f32 %v1387_v33, 0.0 }
 0x48f   :  { %v1423_v31 = vmul.f32 %v3426_v6, %v3426_v6 }
 0x491   :  { %1452 = vadd.xlane.f32.xlu1 %v1423_v31 }
 0x492   :  { %v1389_v11 = vpop.f32.mrf.mxu1 }
 0x493   :  { %v1390_v14 = vadd.f32 %v1389_v11, %v3353_v20 }
 0x495   :  { %v3431_v18 = vmax.f32 %v1390_v14, 0.0 }
 0x497   :  { %v1424_v34 = vmul.f32 %v3431_v18, %v3431_v18 }
 0x499   :  { %1454 = vadd.xlane.f32.xlu2 %v1424_v34 }
 0x49a   :  { %v1391_v15 = vpop.f32.mrf.mxu1 }
 0x49b   :  { %v1392_v24 = vadd.f32 %v1391_v15, %v3356_v9 }
 0x49c   :  { %v1427_v26 = vpop.xlane.xlu0 %1426 }
 0x49d   :  { %v3436_v27 = vmax.f32 %v1392_v24, 0.0  ;;  %v1458_v57 = vmax.f32 %v1427_v26, 1e-24 }
 0x49f   :  { %2718 = vrsqrt.f32 %v1458_v57  ;;  %v1425_v20 = vmul.f32 %v3436_v27, %v3436_v27  ;;  %vm1480_vm1 = vweird.f32 %v1458_v57 }
 0x4a1   :  { %1456 = vadd.xlane.f32.xlu0 %v1425_v20 }
 0x4a4   :  { %v1429_v60 = vpop.xlane.xlu0 %1428 }
 0x4a5   :  { %v2719_v37 = vpop.eup %2718  ;;  %v1459_v40 = vmax.f32 %v1429_v60, 1e-24 }
 0x4a6   :  { %v1475_v36 = vmul.f32 %v2719_v37, %v1458_v57  ;;  %vm1481_vm0 = vweird.f32 %v2719_v37 }
 0x4a7   :  { %2720 = vrsqrt.f32 %v1459_v40  ;;  %vm1482_vm2 = vmor %vm1480_vm1, %vm1481_vm0  ;;  %vm1490_vm4 = vweird.f32 %v1459_v40 }
 0x4a8   :  { %v1476_v46 = vmul.f32 %v2719_v37, %v1475_v36 }
 0x4aa   :  { %v1477_v25 = vmul.f32 0.5, %v1476_v46 }
 0x4ac   :  { %v1478_v41 = vsub.f32 1.5, %v1477_v25  ;;  %v1431_v51 = vpop.xlane.xlu1 %1430 }
 0x4ad   :  { %v2721_v9 = vpop.eup %2720  ;;  %v1460_v43 = vmax.f32 %v1431_v51, 1e-24 }
 0x4ae   :  { %v1485_v48 = vmul.f32 %v2721_v9, %v1459_v40  ;;  %v1479_v23 = vmul.f32 %v2719_v37, %v1478_v41  ;;  %vm1491_vm3 = vweird.f32 %v2721_v9 }
 0x4af   :  { %2722 = vrsqrt.f32 %v1460_v43  ;;  %vm1492_vm5 = vmor %vm1490_vm4, %vm1491_vm3  ;;  %vm1500_vm7 = vweird.f32 %v1460_v43 }
 0x4b0   :  { %v1486_v47 = vmul.f32 %v2721_v9, %v1485_v48  ;;  %v1483_v4 = vsel %vm1482_vm2, %v2719_v37, %v1479_v23 }
 0x4b1   :  { %v1634_v32 = vmul.f32 %v1483_v4, %v3361_v0 }
 0x4b2   :  { %v1487_v50 = vmul.f32 0.5, %v1486_v47 }
 0x4b3   :  { %v1682_v59 = vmax.f32 %v1634_v32, 0.0 }
 0x4b4   :  { %v1488_v49 = vsub.f32 1.5, %v1487_v50  ;;  %v1433_v63 = vpop.xlane.xlu1 %1432 }
 0x4b5   :  { %v2723_v3 = vpop.eup %2722  ;;  %v1461_v45 = vmax.f32 %v1433_v63, 1e-24 }
 0x4b6   :  { %v1495_v56 = vmul.f32 %v2723_v3, %v1460_v43  ;;  %v1489_v13 = vmul.f32 %v2721_v9, %v1488_v49  ;;  %vm1501_vm6 = vweird.f32 %v2723_v3 }
 0x4b7   :  { %2724 = vrsqrt.f32 %v1461_v45  ;;  %vm1502_vm8 = vmor %vm1500_vm7, %vm1501_vm6  ;;  %vm1510_vm10 = vweird.f32 %v1461_v45 }
 0x4b8   :  { %v1496_v28 = vmul.f32 %v2723_v3, %v1495_v56  ;;  %v1493_v55 = vsel %vm1492_vm5, %v2721_v9, %v1489_v13 }
 0x4b9   :  { %v1635_v21 = vmul.f32 %v1493_v55, %v3366_v19 }
 0x4ba   :  { %v1497_v7 = vmul.f32 0.5, %v1496_v28 }
 0x4bb   :  { %v1683_v35 = vmax.f32 %v1635_v21, 0.0 }
 0x4bc   :  { %v1498_v10 = vsub.f32 1.5, %v1497_v7  ;;  %v1435_v29 = vpop.xlane.xlu2 %1434 }
 0x4bd   :  { %v2725_v1 = vpop.eup %2724  ;;  %v1462_v2 = vmax.f32 %v1435_v29, 1e-24  ;;  %v1698_v16 = vpack.c.bf16 %v1683_v35, %v1682_v59 }
 0x4be   :  { %v1505_v5 = vmul.f32 %v2725_v1, %v1461_v45  ;;  %v1499_v12 = vmul.f32 %v2723_v3, %v1498_v10  ;;  %vm1511_vm9 = vweird.f32 %v2725_v1 }
 0x4bf   :  { %2726 = vrsqrt.f32 %v1462_v2  ;;  %1782 = vmatmul.bf16.vlgmr.msrb.gmra.mxu2 %v1698_v16  ;;  %vm1512_vm11 = vmor %vm1510_vm10, %vm1511_vm9  ;;  %vm1520_vm13 = vweird.f32 %v1462_v2 }
 0x4c0   :  { %v1506_v33 = vmul.f32 %v2725_v1, %v1505_v5  ;;  %v1503_v11 = vsel %vm1502_vm8, %v2723_v3, %v1499_v12 }
 0x4c1   :  { %v1636_v15 = vmul.f32 %v1503_v11, %v3371_v22 }
 0x4c2   :  { %v1507_v0 = vmul.f32 0.5, %v1506_v33 }
 0x4c3   :  { %v1684_v20 = vmax.f32 %v1636_v15, 0.0 }
 0x4c4   :  { %v1508_v31 = vsub.f32 1.5, %v1507_v0  ;;  %v1437_v19 = vpop.xlane.xlu2 %1436 }
 0x4c5   :  { %v2727_v38 = vpop.eup %2726  ;;  %v1463_v14 = vmax.f32 %v1437_v19, 1e-24 }
 0x4c6   :  { %v1515_v8 = vmul.f32 %v2727_v38, %v1462_v2  ;;  %v1509_v34 = vmul.f32 %v2725_v1, %v1508_v31  ;;  %vm1521_vm12 = vweird.f32 %v2727_v38 }
 0x4c7   :  { %2728 = vrsqrt.f32 %v1463_v14  ;;  %vm1522_vm14 = vmor %vm1520_vm13, %vm1521_vm12  ;;  %vm1530_vm0 = vweird.f32 %v1463_v14 }
 0x4c8   :  { %v1516_v17 = vmul.f32 %v2727_v38, %v1515_v8  ;;  %v1513_v24 = vsel %vm1512_vm11, %v2725_v1, %v1509_v34 }
 0x4c9   :  { %v1637_v26 = vmul.f32 %v1513_v24, %v3376_v30 }
 0x4ca   :  { %v1517_v57 = vmul.f32 0.5, %v1516_v17 }
 0x4cb   :  { %v1685_v60 = vmax.f32 %v1637_v26, 0.0 }
 0x4cc   :  { %v1518_v37 = vsub.f32 1.5, %v1517_v57  ;;  %v1439_v40 = vpop.xlane.xlu0 %1438 }
 0x4cd   :  { %v2729_v36 = vpop.eup %2728  ;;  %v1464_v46 = vmax.f32 %v1439_v40, 1e-24  ;;  %v1699_v25 = vpack.c.bf16 %v1685_v60, %v1684_v20 }
 0x4ce   :  { %v1525_v41 = vmul.f32 %v2729_v36, %v1463_v14  ;;  %v1519_v9 = vmul.f32 %v2727_v38, %v1518_v37  ;;  %vm1531_vm15 = vweird.f32 %v2729_v36 }
 0x4cf   :  { %2730 = vrsqrt.f32 %v1464_v46  ;;  %1787 = vmatmul.bf16.gmra.mxu2 %v1699_v25  ;;  %vm1532_vm1 = vmor %vm1530_vm0, %vm1531_vm15  ;;  %vm1540_vm3 = vweird.f32 %v1464_v46 }
 0x4d0   :  { %v1526_v51 = vmul.f32 %v2729_v36, %v1525_v41  ;;  %v1523_v48 = vsel %vm1522_vm14, %v2727_v38, %v1519_v9 }
 0x4d1   :  { %v1638_v63 = vmul.f32 %v1523_v48, %v3381_v42 }
 0x4d2   :  { %v1527_v22 = vmul.f32 0.5, %v1526_v51 }
 0x4d3   :  { %v1686_v13 = vmax.f32 %v1638_v63, 0.0 }
 0x4d4   :  { %v1528_v43 = vsub.f32 1.5, %v1527_v22  ;;  %v1441_v30 = vpop.xlane.xlu1 %1440 }
 0x4d5   :  { %v2731_v47 = vpop.eup %2730  ;;  %v1465_v23 = vmax.f32 %v1441_v30, 1e-24 }
 0x4d6   :  { %v1535_v50 = vmul.f32 %v2731_v47, %v1464_v46  ;;  %v1529_v49 = vmul.f32 %v2729_v36, %v1528_v43  ;;  %vm1541_vm2 = vweird.f32 %v2731_v47 }
 0x4d7   :  { %2732 = vrsqrt.f32 %v1465_v23  ;;  %vm1542_vm4 = vmor %vm1540_vm3, %vm1541_vm2  ;;  %vm1550_vm6 = vweird.f32 %v1465_v23 }
 0x4d8   :  { %v1536_v4 = vmul.f32 %v2731_v47, %v1535_v50  ;;  %v1533_v3 = vsel %vm1532_vm1, %v2729_v36, %v1529_v49 }
 0x4d9   :  { %v1639_v45 = vmul.f32 %v1533_v3, %v3386_v39 }
 0x4da   :  { %v1537_v56 = vmul.f32 0.5, %v1536_v4 }
 0x4db   :  { %v1687_v32 = vmax.f32 %v1639_v45, 0.0 }
 0x4dc   :  { %v1538_v28 = vsub.f32 1.5, %v1537_v56  ;;  %v1443_v55 = vpop.xlane.xlu2 %1442 }
 0x4dd   :  { %v2733_v21 = vpop.eup %2732  ;;  %v1466_v7 = vmax.f32 %v1443_v55, 1e-24  ;;  %v1700_v59 = vpack.c.bf16 %v1687_v32, %v1686_v13 }
 0x4de   :  { %v1545_v35 = vmul.f32 %v2733_v21, %v1465_v23  ;;  %v1539_v29 = vmul.f32 %v2731_v47, %v1538_v28  ;;  %vm1551_vm5 = vweird.f32 %v2733_v21 }
 0x4df   :  { %2734 = vrsqrt.f32 %v1466_v7  ;;  %1792 = vmatmul.bf16.gmra.mxu2 %v1700_v59  ;;  %vm1552_vm7 = vmor %vm1550_vm6, %vm1551_vm5  ;;  %vm1560_vm9 = vweird.f32 %v1466_v7 }
 0x4e0   :  { %v1546_v10 = vmul.f32 %v2733_v21, %v1545_v35  ;;  %v1543_v2 = vsel %vm1542_vm4, %v2731_v47, %v1539_v29 }
 0x4e1   :  { %v1640_v0 = vmul.f32 %v1543_v2, %v3391_v44 }
 0x4e2   :  { %v1547_v42 = vmul.f32 0.5, %v1546_v10 }
 0x4e3   :  { %v1688_v14 = vmax.f32 %v1640_v0, 0.0 }
 0x4e4   :  { %v1548_v1 = vsub.f32 1.5, %v1547_v42  ;;  %v1445_v39 = vpop.xlane.xlu0 %1444 }
 0x4e5   :  { %v2735_v16 = vpop.eup %2734  ;;  %v1467_v5 = vmax.f32 %v1445_v39, 1e-24 }
 0x4e6   :  { %v1555_v33 = vmul.f32 %v2735_v16, %v1466_v7  ;;  %v1549_v12 = vmul.f32 %v2733_v21, %v1548_v1  ;;  %vm1561_vm8 = vweird.f32 %v2735_v16 }
 0x4e7   :  { %2736 = vrsqrt.f32 %v1467_v5  ;;  %vm1562_vm10 = vmor %vm1560_vm9, %vm1561_vm8  ;;  %vm1570_vm12 = vweird.f32 %v1467_v5 }
 0x4e8   :  { %v1556_v31 = vmul.f32 %v2735_v16, %v1555_v33  ;;  %v1553_v19 = vsel %vm1552_vm7, %v2733_v21, %v1549_v12 }
 0x4e9   :  { %v1641_v11 = vmul.f32 %v1553_v19, %v3396_v62 }
 0x4ea   :  { %v1557_v38 = vmul.f32 0.5, %v1556_v31  ;;  %v2578_v31 = vld [vmem:[#allocation15 + $0x38] sm:$0xff] }
 0x4eb   :  { %v1689_v8 = vmax.f32 %v1641_v11, 0.0  ;;  %1899 = vmatpush.bf16.msrb.mxu3 %v2578_v31 }
 0x4ec   :  { %v1558_v34 = vsub.f32 1.5, %v1557_v38  ;;  %v1447_v15 = vpop.xlane.xlu1 %1446 }
 0x4ed   :  { %v2737_v17 = vpop.eup %2736  ;;  %v1468_v24 = vmax.f32 %v1447_v15, 1e-24  ;;  %v1701_v26 = vpack.c.bf16 %v1689_v8, %v1688_v14 }
 0x4ee   :  { %v1565_v57 = vmul.f32 %v2737_v17, %v1467_v5  ;;  %v1559_v60 = vmul.f32 %v2735_v16, %v1558_v34  ;;  %vm1571_vm11 = vweird.f32 %v2737_v17  ;;  %v2576_v34 = vld [vmem:[#allocation15 + $0x28] sm:$0xff] }
 0x4ef   :  { %2738 = vrsqrt.f32 %v1468_v24  ;;  %1797 = vmatmul.bf16.gmra.mxu2 %v1701_v26  ;;  %vm1572_vm13 = vmor %vm1570_vm12, %vm1571_vm11  ;;  %vm1580_vm15 = vweird.f32 %v1468_v24 }
 0x4f0   :  { %v1566_v20 = vmul.f32 %v2737_v17, %v1565_v57  ;;  %v1563_v40 = vsel %vm1562_vm10, %v2735_v16, %v1559_v60 }
 0x4f1   :  { %v1642_v51 = vmul.f32 %v1563_v40, %v3401_v52 }
 0x4f2   :  { %v1567_v44 = vmul.f32 0.5, %v1566_v20 }
 0x4f3   :  { %v1690_v48 = vmax.f32 %v1642_v51, 0.0 }
 0x4f4   :  { %v1568_v37 = vsub.f32 1.5, %v1567_v44  ;;  %v1449_v62 = vpop.xlane.xlu2 %1448  ;;  %v2575_v44 = vld [vmem:[#allocation15 + $0x20] sm:$0xff] }
 0x4f5   :  { %v2739_v36 = vpop.eup %2738  ;;  %v1469_v46 = vmax.f32 %v1449_v62, 1e-24 }
 0x4f6   :  { %v1575_v25 = vmul.f32 %v2739_v36, %v1468_v24  ;;  %v1569_v41 = vmul.f32 %v2737_v17, %v1568_v37  ;;  %vm1581_vm14 = vweird.f32 %v2739_v36 }
 0x4f7   :  { %2740 = vrsqrt.f32 %v1469_v46  ;;  %vm1582_vm0 = vmor %vm1580_vm15, %vm1581_vm14  ;;  %vm1590_vm2 = vweird.f32 %v1469_v46 }
 0x4f8   :  { %v1576_v9 = vmul.f32 %v2739_v36, %v1575_v25  ;;  %v1573_v22 = vsel %vm1572_vm13, %v2737_v17, %v1569_v41  ;;  %v2574_v25 = vld [vmem:[#allocation15 + $0x18] sm:$0xff] }
 0x4f9   :  { %v1643_v43 = vmul.f32 %v1573_v22, %v3406_v53 }
 0x4fa   :  { %v1577_v30 = vmul.f32 0.5, %v1576_v9 }
 0x4fb   :  { %v1691_v47 = vmax.f32 %v1643_v43, 0.0 }
 0x4fc   :  { %v1578_v23 = vsub.f32 1.5, %v1577_v30  ;;  %v1451_v50 = vpop.xlane.xlu0 %1450  ;;  %v2573_v30 = vld [vmem:[#allocation15 + $0x10] sm:$0xff] }
 0x4fd   :  { %v2741_v49 = vpop.eup %2740  ;;  %v1470_v63 = vmax.f32 %v1451_v50, 1e-24  ;;  %v1702_v4 = vpack.c.bf16 %v1691_v47, %v1690_v48  ;;  %v2572_v47 = vld [vmem:[#allocation15 + $0x8] sm:$0xff] }
 0x4fe   :  { %v1585_v3 = vmul.f32 %v2741_v49, %v1469_v46  ;;  %v1579_v56 = vmul.f32 %v2739_v36, %v1578_v23  ;;  %vm1591_vm1 = vweird.f32 %v2741_v49 }
 0x4ff   :  { %2742 = vrsqrt.f32 %v1470_v63  ;;  %1802 = vmatmul.bf16.gmra.mxu2 %v1702_v4  ;;  %vm1592_vm3 = vmor %vm1590_vm2, %vm1591_vm1  ;;  %vm1600_vm5 = vweird.f32 %v1470_v63  ;;  %v2571_v4 = vld [vmem:[#allocation15] sm:$0xff] }
 0x500   :  { %v1586_v45 = vmul.f32 %v2741_v49, %v1585_v3  ;;  %v1583_v32 = vsel %vm1582_vm0, %v2739_v36, %v1579_v56 }
 0x501   :  { %v1644_v59 = vmul.f32 %v1583_v32, %v3411_v54  ;;  %v2577_v54 = vld [vmem:[#allocation15 + $0x30] sm:$0xff] }
 0x502   :  { %v1587_v52 = vmul.f32 0.5, %v1586_v45  ;;  %1900 = vmatpush.bf16.msrb.mxu3 %v2577_v54 }
 0x503   :  { %v1692_v1 = vmax.f32 %v1644_v59, 0.0 }
 0x504   :  { %v1588_v13 = vsub.f32 1.5, %v1587_v52  ;;  %v1453_v53 = vpop.xlane.xlu1 %1452 }
 0x505   :  { %v2743_v28 = vpop.eup %2742  ;;  %v1471_v55 = vmax.f32 %v1453_v53, 1e-24 }
 0x506   :  { %v1595_v21 = vmul.f32 %v2743_v28, %v1470_v63  ;;  %v1589_v7 = vmul.f32 %v2741_v49, %v1588_v13  ;;  %vm1601_vm4 = vweird.f32 %v2743_v28  ;;  %1901 = vmatpush.bf16.msrb.mxu3 %v2576_v34  ;;  %v2716_v13 = vld [vmem:[%s3652_s7] ss:$0 sm:$0xff] }
 0x507   :  { %2744 = vrsqrt.f32 %v1471_v55  ;;  %vm1602_vm6 = vmor %vm1600_vm5, %vm1601_vm4  ;;  %vm1610_vm8 = vweird.f32 %v1471_v55 }
 0x508   :  { %v1596_v35 = vmul.f32 %v2743_v28, %v1595_v21  ;;  %v1593_v10 = vsel %vm1592_vm3, %v2741_v49, %v1589_v7 }
 0x509   :  { %v1645_v29 = vmul.f32 %v1593_v10, %v3416_v58 }
 0x50a   :  { %v1597_v42 = vmul.f32 0.5, %v1596_v35  ;;  %1902 = vmatpush.bf16.msrb.mxu3 %v2575_v44 }
 0x50b   :  { %v1693_v39 = vmax.f32 %v1645_v29, 0.0 }
 0x50c   :  { %v1598_v2 = vsub.f32 1.5, %v1597_v42  ;;  %v1455_v16 = vpop.xlane.xlu2 %1454 }
 0x50d   :  { %v2745_v5 = vpop.eup %2744  ;;  %v1472_v33 = vmax.f32 %v1455_v16, 1e-24  ;;  %v1703_v12 = vpack.c.bf16 %v1693_v39, %v1692_v1 }
 0x50e   :  { %v1605_v0 = vmul.f32 %v2745_v5, %v1471_v55  ;;  %v1599_v11 = vmul.f32 %v2743_v28, %v1598_v2  ;;  %vm1611_vm7 = vweird.f32 %v2745_v5  ;;  %1903 = vmatpush.bf16.msrb.mxu3 %v2574_v25 }
 0x50f   :  { %2746 = vrsqrt.f32 %v1472_v33  ;;  %1807 = vmatmul.bf16.gmra.mxu2 %v1703_v12  ;;  %vm1612_vm9 = vmor %vm1610_vm8, %vm1611_vm7  ;;  %vm1620_vm11 = vweird.f32 %v1472_v33 }
 0x510   :  { %v1606_v19 = vmul.f32 %v2745_v5, %v1605_v0  ;;  %v1603_v8 = vsel %vm1602_vm6, %v2743_v28, %v1599_v11 }
 0x511   :  { %v1646_v57 = vmul.f32 %v1603_v8, %v3421_v61 }
 0x512   :  { %v1607_v38 = vmul.f32 0.5, %v1606_v19  ;;  %1904 = vmatpush.bf16.msrb.mxu3 %v2573_v30 }
 0x513   :  { %v1694_v40 = vmax.f32 %v1646_v57, 0.0 }
 0x514   :  { %v1608_v58 = vsub.f32 1.5, %v1607_v38  ;;  %v1457_v14 = vpop.xlane.xlu0 %1456 }
 0x515   :  { %v2747_v15 = vpop.eup %2746  ;;  %v1473_v17 = vmax.f32 %v1457_v14, 1e-24 }
 0x516   :  { %v1615_v24 = vmul.f32 %v2747_v15, %v1472_v33  ;;  %v1609_v26 = vmul.f32 %v2745_v5, %v1608_v58  ;;  %vm1621_vm10 = vweird.f32 %v2747_v15  ;;  %1905 = vmatpush.bf16.msrb.mxu3 %v2572_v47 }
 0x517   :  { %2748 = vrsqrt.f32 %v1473_v17  ;;  %vm1622_vm12 = vmor %vm1620_vm11, %vm1621_vm10  ;;  %vm1630_vm14 = vweird.f32 %v1473_v17 }
 0x518   :  { %v1616_v20 = vmul.f32 %v2747_v15, %v1615_v24  ;;  %v1613_v60 = vsel %vm1612_vm9, %v2745_v5, %v1609_v26 }
 0x519   :  { %v1647_v37 = vmul.f32 %v1613_v60, %v3426_v6 }
 0x51a   :  { %v1617_v62 = vmul.f32 0.5, %v1616_v20  ;;  %1906 = vmatpush.bf16.msrb.mxu3 %v2571_v4 }
 0x51b   :  { %v1695_v36 = vmax.f32 %v1647_v37, 0.0 }
 0x51c   :  { %v1618_v46 = vsub.f32 1.5, %v1617_v62  ;;  %v1948_v62 = vlaneseq }
 0x51d   :  { %v2749_v41 = vpop.eup %2748  ;;  %v1704_v51 = vpack.c.bf16 %v1695_v36, %v1694_v40  ;;  %v3464_v36 = vld [vmem:[%s3654_s9] ss:$0 sm:$0xff]  ;;  %s3028_s9 = smov [#allocation16]  }
 0x51e   :  { %v1625_v9 = vmul.f32 %v2749_v41, %v1473_v17  ;;  %v1619_v43 = vmul.f32 %v2747_v15, %v1618_v46  ;;  %vm1631_vm13 = vweird.f32 %v2749_v41  ;;  %v3459_v40 = vand.u32 127, %v1948_v62  ;;  %s2147_s27 = sshll.u32 %s3028_s9, 4  ;;  %s2148_s27 = int_to_ptr.vmem [resolvable:$true] %s2147_s27 }
 0x51f   :  { %1812 = vmatmul.bf16.gmra.mxu2 %v1704_v51  ;;  %vm1632_vm15 = vmor %vm1630_vm14, %vm1631_vm13 }
 0x520   :  { %v1626_v22 = vmul.f32 %v2749_v41, %v1625_v9  ;;  %v1623_v6 = vsel %vm1622_vm12, %v2747_v15, %v1619_v43  ;;  %vm1950_vm0 = vcmp.lt.s32.totalorder %v3459_v40, 4 }
 0x521   :  { %v1648_v50 = vmul.f32 %v1623_v6, %v3431_v18 }
 0x522   :  { %v1627_v61 = vmul.f32 0.5, %v1626_v22 }
 0x523   :  { %v1696_v3 = vmax.f32 %v1648_v50, 0.0 }
 0x524   :  { %v1628_v48 = vsub.f32 1.5, %v1627_v61 }
 0x526   :  { %v1629_v23 = vmul.f32 %v2749_v41, %v1628_v48 }
 0x528   :  { %v1633_v49 = vsel %vm1632_vm15, %v2749_v41, %v1629_v23 }
 0x529   :  { %v1649_v63 = vmul.f32 %v1633_v49, %v3436_v27 }
 0x52b   :  { %v1697_v45 = vmax.f32 %v1649_v63, 0.0 }
 0x52d   :  { %v1705_v56 = vpack.c.bf16 %v1697_v45, %v1696_v3 }
 0x52f   :  { %1817 = vmatmul.bf16.gmra.mxu2 %v1705_v56 }
 0x542   :  { %v1783_v52 = vpop.f32.mrf.mxu2 }
 0x543   :  { %v1784_v32 = vadd.f32 %v2716_v13, %v1783_v52 }
 0x54a   :  { %v1785_v53 = vpop.f32.mrf.mxu2 }
 0x54b   :  { %v1786_v28 = vadd.f32 %v2716_v13, %v1785_v53 }
 0x54d   :  { %v1823_v55 = vpack.c.bf16 %v1786_v28, %v1784_v32 }
 0x54f   :  { %1907 = vmatmul.bf16.vlgmr.msrb.gmra.mxu3 %v1823_v55 }
 0x552   :  { %v1788_v18 = vpop.f32.mrf.mxu2 }
 0x553   :  { %v1789_v7 = vadd.f32 %v2716_v13, %v1788_v18 }
 0x55a   :  { %v1790_v21 = vpop.f32.mrf.mxu2 }
 0x55b   :  { %v1791_v27 = vadd.f32 %v2716_v13, %v1790_v21 }
 0x55d   :  { %v1824_v59 = vpack.c.bf16 %v1791_v27, %v1789_v7 }
 0x55f   :  { %1912 = vmatmul.bf16.gmra.mxu3 %v1824_v59 }
 0x562   :  { %v1793_v35 = vpop.f32.mrf.mxu2 }
 0x563   :  { %v1794_v29 = vadd.f32 %v2716_v13, %v1793_v35 }
 0x56a   :  { %v1795_v10 = vpop.f32.mrf.mxu2 }
 0x56b   :  { %v1796_v42 = vadd.f32 %v2716_v13, %v1795_v10 }
 0x56d   :  { %v1825_v1 = vpack.c.bf16 %v1796_v42, %v1794_v29 }
 0x56f   :  { %1917 = vmatmul.bf16.gmra.mxu3 %v1825_v1 }
 0x572   :  { %v1798_v39 = vpop.f32.mrf.mxu2 }
 0x573   :  { %v1799_v16 = vadd.f32 %v2716_v13, %v1798_v39 }
 0x57a   :  { %v1800_v2 = vpop.f32.mrf.mxu2 }
 0x57b   :  { %v1801_v5 = vadd.f32 %v2716_v13, %v1800_v2 }
 0x57d   :  { %v1826_v33 = vpack.c.bf16 %v1801_v5, %v1799_v16 }
 0x57f   :  { %1922 = vmatmul.bf16.gmra.mxu3 %v1826_v33 }
 0x582   :  { %v1803_v12 = vpop.f32.mrf.mxu2 }
 0x583   :  { %v1804_v31 = vadd.f32 %v2716_v13, %v1803_v12 }
 0x58a   :  { %v1805_v0 = vpop.f32.mrf.mxu2 }
 0x58b   :  { %v1806_v19 = vadd.f32 %v2716_v13, %v1805_v0 }
 0x58d   :  { %v1827_v11 = vpack.c.bf16 %v1806_v19, %v1804_v31 }
 0x58f   :  { %1927 = vmatmul.bf16.gmra.mxu3 %v1827_v11 }
 0x592   :  { %v1808_v54 = vpop.f32.mrf.mxu2 }
 0x593   :  { %v1809_v58 = vadd.f32 %v2716_v13, %v1808_v54 }
 0x59a   :  { %v1810_v38 = vpop.f32.mrf.mxu2 }
 0x59b   :  { %v1811_v14 = vadd.f32 %v2716_v13, %v1810_v38 }
 0x59d   :  { %v1828_v8 = vpack.c.bf16 %v1811_v14, %v1809_v58 }
 0x59f   :  { %1932 = vmatmul.bf16.gmra.mxu3 %v1828_v8 }
 0x5a2   :  { %v1813_v34 = vpop.f32.mrf.mxu2 }
 0x5a3   :  { %v1814_v17 = vadd.f32 %v2716_v13, %v1813_v34 }
 0x5aa   :  { %v1815_v15 = vpop.f32.mrf.mxu2 }
 0x5ab   :  { %v1816_v24 = vadd.f32 %v2716_v13, %v1815_v15 }
 0x5ad   :  { %v1829_v26 = vpack.c.bf16 %v1816_v24, %v1814_v17 }
 0x5af   :  { %1937 = vmatmul.bf16.gmra.mxu3 %v1829_v26 }
 0x5b2   :  { %v1818_v57 = vpop.f32.mrf.mxu2 }
 0x5b3   :  { %v1819_v60 = vadd.f32 %v2716_v13, %v1818_v57 }
 0x5ba   :  { %v1820_v20 = vpop.f32.mrf.mxu2 }
 0x5bb   :  { %v1821_v44 = vadd.f32 %v2716_v13, %v1820_v20 }
 0x5bd   :  { %v1830_v37 = vpack.c.bf16 %v1821_v44, %v1819_v60 }
 0x5bf   :  { %1942 = vmatmul.bf16.gmra.mxu3 %v1830_v37 }
 0x5d2   :  { %v1908_v46 = vpop.f32.mrf.mxu3 }
 0x5d3   :  { %v1909_v25 = vadd.f32 %v3464_v36, %v1908_v46 }
 0x5d5   :  { %v1951_v41 = vsel %vm1950_vm0, %v1909_v25, -1e+30 }
 0x5d6   :  { %1967 = vmax.xlane.f32.xlu1 %v1951_v41 }
 0x5da   :  { %v1910_v51 = vpop.f32.mrf.mxu3 }
 0x5db   :  { %v1911_v9 = vadd.f32 %v3464_v36, %v1910_v51 }
 0x5dd   :  { %v3473_v22 = vsel %vm1950_vm0, %v1911_v9, -1e+30 }
 0x5de   :  { %1969 = vmax.xlane.f32.xlu2 %v3473_v22 }
 0x5e2   :  { %v1913_v43 = vpop.f32.mrf.mxu3 }
 0x5e3   :  { %v1914_v61 = vadd.f32 %v3464_v36, %v1913_v43 }
 0x5e5   :  { %v3479_v30 = vsel %vm1950_vm0, %v1914_v61, -1e+30 }
 0x5e6   :  { %1971 = vmax.xlane.f32.xlu0 %v3479_v30 }
 0x5ea   :  { %v1915_v48 = vpop.f32.mrf.mxu3 }
 0x5eb   :  { %v1916_v6 = vadd.f32 %v3464_v36, %v1915_v48 }
 0x5ed   :  { %v3485_v47 = vsel %vm1950_vm0, %v1916_v6, -1e+30 }
 0x5ee   :  { %1973 = vmax.xlane.f32.xlu1 %v3485_v47 }
 0x5f2   :  { %v1918_v23 = vpop.f32.mrf.mxu3 }
 0x5f3   :  { %v1919_v50 = vadd.f32 %v3464_v36, %v1918_v23 }
 0x5f5   :  { %v3491_v49 = vsel %vm1950_vm0, %v1919_v50, -1e+30 }
 0x5f6   :  { %1975 = vmax.xlane.f32.xlu2 %v3491_v49 }
 0x5fa   :  { %v1920_v63 = vpop.f32.mrf.mxu3 }
 0x5fb   :  { %v1921_v4 = vadd.f32 %v3464_v36, %v1920_v63 }
 0x5fd   :  { %v3497_v3 = vsel %vm1950_vm0, %v1921_v4, -1e+30 }
 0x5fe   :  { %1977 = vmax.xlane.f32.xlu0 %v3497_v3 }
 0x602   :  { %v1923_v45 = vpop.f32.mrf.mxu3 }
 0x603   :  { %v1924_v56 = vadd.f32 %v3464_v36, %v1923_v45 }
 0x605   :  { %v3503_v52 = vsel %vm1950_vm0, %v1924_v56, -1e+30 }
 0x606   :  { %1979 = vmax.xlane.f32.xlu1 %v3503_v52 }
 0x60a   :  { %v1925_v13 = vpop.f32.mrf.mxu3 }
 0x60b   :  { %v1926_v53 = vadd.f32 %v3464_v36, %v1925_v13 }
 0x60d   :  { %v3509_v32 = vsel %vm1950_vm0, %v1926_v53, -1e+30 }
 0x60e   :  { %1981 = vmax.xlane.f32.xlu2 %v3509_v32 }
 0x612   :  { %v1928_v28 = vpop.f32.mrf.mxu3 }
 0x613   :  { %v1929_v55 = vadd.f32 %v3464_v36, %v1928_v28 }
 0x615   :  { %v3515_v18 = vsel %vm1950_vm0, %v1929_v55, -1e+30 }
 0x616   :  { %1983 = vmax.xlane.f32.xlu0 %v3515_v18 }
 0x61a   :  { %v1930_v21 = vpop.f32.mrf.mxu3 }
 0x61b   :  { %v1931_v7 = vadd.f32 %v3464_v36, %v1930_v21 }
 0x61d   :  { %v3521_v27 = vsel %vm1950_vm0, %v1931_v7, -1e+30 }
 0x61e   :  { %1985 = vmax.xlane.f32.xlu1 %v3521_v27 }
 0x622   :  { %v1933_v59 = vpop.f32.mrf.mxu3 }
 0x623   :  { %v1934_v35 = vadd.f32 %v3464_v36, %v1933_v59 }
 0x625   :  { %v3527_v10 = vsel %vm1950_vm0, %v1934_v35, -1e+30 }
 0x626   :  { %1987 = vmax.xlane.f32.xlu2 %v3527_v10 }
 0x62a   :  { %v1935_v29 = vpop.f32.mrf.mxu3 }
 0x62b   :  { %v1936_v42 = vadd.f32 %v3464_v36, %v1935_v29 }
 0x62d   :  { %v3533_v1 = vsel %vm1950_vm0, %v1936_v42, -1e+30 }
 0x62e   :  { %1989 = vmax.xlane.f32.xlu0 %v3533_v1 }
 0x632   :  { %v1938_v39 = vpop.f32.mrf.mxu3 }
 0x633   :  { %v1939_v2 = vadd.f32 %v3464_v36, %v1938_v39 }
 0x635   :  { %v3539_v16 = vsel %vm1950_vm0, %v1939_v2, -1e+30 }
 0x636   :  { %1991 = vmax.xlane.f32.xlu1 %v3539_v16 }
 0x63a   :  { %v1940_v5 = vpop.f32.mrf.mxu3 }
 0x63b   :  { %v1941_v33 = vadd.f32 %v3464_v36, %v1940_v5 }
 0x63d   :  { %v3545_v12 = vsel %vm1950_vm0, %v1941_v33, -1e+30 }
 0x63e   :  { %1993 = vmax.xlane.f32.xlu2 %v3545_v12 }
 0x642   :  { %v1943_v0 = vpop.f32.mrf.mxu3 }
 0x643   :  { %v1944_v31 = vadd.f32 %v3464_v36, %v1943_v0 }
 0x645   :  { %v3551_v19 = vsel %vm1950_vm0, %v1944_v31, -1e+30 }
 0x646   :  { %1995 = vmax.xlane.f32.xlu0 %v3551_v19 }
 0x649   :  { %v1968_v11 = vpop.xlane.xlu1 %1967 }
 0x64a   :  { %v3554_v54 = vsub.f32 %v1951_v41, %v1968_v11  ;;  %v1945_v38 = vpop.f32.mrf.mxu3 }
 0x64b   :  { %v1946_v58 = vadd.f32 %v3464_v36, %v1945_v38 }
 0x64c   :  { %v2015_v14 = vmul.f32 1.442695, %v3554_v54 }
 0x64d   :  { %v3560_v8 = vsel %vm1950_vm0, %v1946_v58, -1e+30 }
 0x64e   :  { %2750 = vpow2.f32 %v2015_v14  ;;  %1997 = vmax.xlane.f32.xlu1 %v3560_v8 }
 0x651   :  { %v1970_v34 = vpop.xlane.xlu2 %1969 }
 0x652   :  { %v3564_v15 = vsub.f32 %v3473_v22, %v1970_v34 }
 0x654   :  { %v2751_v17 = vpop.eup %2750  ;;  %v2017_v24 = vmul.f32 1.442695, %v3564_v15 }
 0x655   :  { %2047 = vadd.xlane.f32.xlu2 %v2751_v17 }
 0x656   :  { %2752 = vpow2.f32 %v2017_v24 }
 0x659   :  { %v1972_v26 = vpop.xlane.xlu0 %1971 }
 0x65a   :  { %v3568_v57 = vsub.f32 %v3479_v30, %v1972_v26 }
 0x65c   :  { %v2753_v20 = vpop.eup %2752  ;;  %v2019_v60 = vmul.f32 1.442695, %v3568_v57 }
 0x65d   :  { %2049 = vadd.xlane.f32.xlu0 %v2753_v20 }
 0x65e   :  { %2754 = vpow2.f32 %v2019_v60 }
 0x661   :  { %v1974_v44 = vpop.xlane.xlu1 %1973 }
 0x662   :  { %v3572_v37 = vsub.f32 %v3485_v47, %v1974_v44 }
 0x664   :  { %v2755_v62 = vpop.eup %2754  ;;  %v2021_v40 = vmul.f32 1.442695, %v3572_v37 }
 0x665   :  { %2051 = vadd.xlane.f32.xlu1 %v2755_v62 }
 0x666   :  { %2756 = vpow2.f32 %v2021_v40 }
 0x669   :  { %v1976_v36 = vpop.xlane.xlu2 %1975 }
 0x66a   :  { %v3576_v46 = vsub.f32 %v3491_v49, %v1976_v36 }
 0x66c   :  { %v2757_v25 = vpop.eup %2756  ;;  %v2023_v41 = vmul.f32 1.442695, %v3576_v46 }
 0x66d   :  { %2053 = vadd.xlane.f32.xlu2 %v2757_v25 }
 0x66e   :  { %2758 = vpow2.f32 %v2023_v41 }
 0x671   :  { %v1978_v51 = vpop.xlane.xlu0 %1977 }
 0x672   :  { %v3580_v9 = vsub.f32 %v3497_v3, %v1978_v51 }
 0x674   :  { %v2759_v22 = vpop.eup %2758  ;;  %v2025_v43 = vmul.f32 1.442695, %v3580_v9 }
 0x675   :  { %2055 = vadd.xlane.f32.xlu0 %v2759_v22 }
 0x676   :  { %2760 = vpow2.f32 %v2025_v43 }
 0x679   :  { %v1980_v61 = vpop.xlane.xlu1 %1979 }
 0x67a   :  { %v3584_v30 = vsub.f32 %v3503_v52, %v1980_v61 }
 0x67c   :  { %v2761_v48 = vpop.eup %2760  ;;  %v2027_v6 = vmul.f32 1.442695, %v3584_v30 }
 0x67d   :  { %2057 = vadd.xlane.f32.xlu1 %v2761_v48 }
 0x67e   :  { %2762 = vpow2.f32 %v2027_v6 }
 0x681   :  { %v1982_v47 = vpop.xlane.xlu2 %1981 }
 0x682   :  { %v3588_v23 = vsub.f32 %v3509_v32, %v1982_v47 }
 0x684   :  { %v2763_v50 = vpop.eup %2762  ;;  %v2029_v49 = vmul.f32 1.442695, %v3588_v23 }
 0x685   :  { %2059 = vadd.xlane.f32.xlu2 %v2763_v50 }
 0x686   :  { %2764 = vpow2.f32 %v2029_v49 }
 0x689   :  { %v1984_v63 = vpop.xlane.xlu0 %1983 }
 0x68a   :  { %v3592_v4 = vsub.f32 %v3515_v18, %v1984_v63 }
 0x68c   :  { %v2765_v3 = vpop.eup %2764  ;;  %v2031_v45 = vmul.f32 1.442695, %v3592_v4 }
 0x68d   :  { %2061 = vadd.xlane.f32.xlu0 %v2765_v3 }
 0x68e   :  { %2766 = vpow2.f32 %v2031_v45 }
 0x691   :  { %v1986_v56 = vpop.xlane.xlu1 %1985 }
 0x692   :  { %v3596_v52 = vsub.f32 %v3521_v27, %v1986_v56 }
 0x694   :  { %v2767_v13 = vpop.eup %2766  ;;  %v2033_v53 = vmul.f32 1.442695, %v3596_v52 }
 0x695   :  { %2063 = vadd.xlane.f32.xlu1 %v2767_v13 }
 0x696   :  { %2768 = vpow2.f32 %v2033_v53 }
 0x699   :  { %v1988_v32 = vpop.xlane.xlu2 %1987 }
 0x69a   :  { %v3600_v28 = vsub.f32 %v3527_v10, %v1988_v32 }
 0x69c   :  { %v2769_v55 = vpop.eup %2768  ;;  %v2035_v18 = vmul.f32 1.442695, %v3600_v28 }
 0x69d   :  { %2065 = vadd.xlane.f32.xlu2 %v2769_v55 }
 0x69e   :  { %2770 = vpow2.f32 %v2035_v18 }
 0x6a1   :  { %v1990_v21 = vpop.xlane.xlu0 %1989 }
 0x6a2   :  { %v3604_v7 = vsub.f32 %v3533_v1, %v1990_v21 }
 0x6a4   :  { %v2771_v27 = vpop.eup %2770  ;;  %v2037_v59 = vmul.f32 1.442695, %v3604_v7 }
 0x6a5   :  { %2067 = vadd.xlane.f32.xlu0 %v2771_v27 }
 0x6a6   :  { %2772 = vpow2.f32 %v2037_v59 }
 0x6a9   :  { %v1992_v35 = vpop.xlane.xlu1 %1991 }
 0x6aa   :  { %v3608_v29 = vsub.f32 %v3539_v16, %v1992_v35 }
 0x6ac   :  { %v2773_v10 = vpop.eup %2772  ;;  %v2039_v42 = vmul.f32 1.442695, %v3608_v29 }
 0x6ad   :  { %2069 = vadd.xlane.f32.xlu1 %v2773_v10 }
 0x6ae   :  { %2774 = vpow2.f32 %v2039_v42 }
 0x6b1   :  { %v1994_v39 = vpop.xlane.xlu2 %1993 }
 0x6b2   :  { %v3612_v2 = vsub.f32 %v3545_v12, %v1994_v39 }
 0x6b4   :  { %v2775_v1 = vpop.eup %2774  ;;  %v2041_v5 = vmul.f32 1.442695, %v3612_v2 }
 0x6b5   :  { %2071 = vadd.xlane.f32.xlu2 %v2775_v1 }
 0x6b6   :  { %2776 = vpow2.f32 %v2041_v5 }
 0x6b9   :  { %v1996_v33 = vpop.xlane.xlu0 %1995 }
 0x6ba   :  { %v3616_v0 = vsub.f32 %v3551_v19, %v1996_v33 }
 0x6bc   :  { %v2777_v16 = vpop.eup %2776  ;;  %v2043_v31 = vmul.f32 1.442695, %v3616_v0 }
 0x6bd   :  { %2073 = vadd.xlane.f32.xlu0 %v2777_v16 }
 0x6be   :  { %2778 = vpow2.f32 %v2043_v31 }
 0x6c1   :  { %v1998_v11 = vpop.xlane.xlu1 %1997 }
 0x6c2   :  { %v3620_v38 = vsub.f32 %v3560_v8, %v1998_v11 }
 0x6c4   :  { %v2779_v12 = vpop.eup %2778  ;;  %v2045_v58 = vmul.f32 1.442695, %v3620_v38 }
 0x6c5   :  { %2075 = vadd.xlane.f32.xlu1 %v2779_v12 }
 0x6c6   :  { %2780 = vpow2.f32 %v2045_v58 }
 0x6c8   :  { %v2048_v14 = vpop.xlane.xlu2 %2047 }
 0x6c9   :  { %2782 = vlog2.f32 %v2048_v14 }
 0x6cc   :  { %v2781_v34 = vpop.eup %2780 }
 0x6cd   :  { %2077 = vadd.xlane.f32.xlu2 %v2781_v34 }
 0x6cf   :  { %v2783_v19 = vpop.eup %2782 }
 0x6d0   :  { %v2080_v17 = vmul.f32 0.6931472, %v2783_v19  ;;  %v2050_v24 = vpop.xlane.xlu0 %2049 }
 0x6d1   :  { %2784 = vlog2.f32 %v2050_v24 }
 0x6d2   :  { %v2111_v26 = vsub.f32 %v3554_v54, %v2080_v17 }
 0x6d4   :  { %2127 = vst [vmem:[#allocation16] sm:$0xff] %v2111_v26 }
 0x6d7   :  { %v2785_v20 = vpop.eup %2784 }
 0x6d8   :  { %v2082_v60 = vmul.f32 0.6931472, %v2785_v20  ;;  %v2052_v8 = vpop.xlane.xlu1 %2051 }
 0x6d9   :  { %2786 = vlog2.f32 %v2052_v8 }
 0x6da   :  { %v2112_v44 = vsub.f32 %v3564_v15, %v2082_v60 }
 0x6dc   :  { %2128 = vst [vmem:[#allocation16 + $0x8] sm:$0xff] %v2112_v44 }
 0x6df   :  { %v2787_v62 = vpop.eup %2786 }
 0x6e0   :  { %v2084_v40 = vmul.f32 0.6931472, %v2787_v62  ;;  %v2054_v36 = vpop.xlane.xlu2 %2053 }
 0x6e1   :  { %2788 = vlog2.f32 %v2054_v36 }
 0x6e2   :  { %v2113_v25 = vsub.f32 %v3568_v57, %v2084_v40 }
 0x6e4   :  { %2129 = vst [vmem:[#allocation16 + $0x10] sm:$0xff] %v2113_v25 }
 0x6e7   :  { %v2789_v41 = vpop.eup %2788 }
 0x6e8   :  { %v2086_v51 = vmul.f32 0.6931472, %v2789_v41  ;;  %v2056_v22 = vpop.xlane.xlu0 %2055 }
 0x6e9   :  { %2790 = vlog2.f32 %v2056_v22 }
 0x6ea   :  { %v2114_v54 = vsub.f32 %v3572_v37, %v2086_v51 }
 0x6ec   :  { %2130 = vst [vmem:[#allocation16 + $0x18] sm:$0xff] %v2114_v54 }
 0x6ef   :  { %v2791_v43 = vpop.eup %2790 }
 0x6f0   :  { %v2088_v61 = vmul.f32 0.6931472, %v2791_v43  ;;  %v2058_v48 = vpop.xlane.xlu1 %2057 }
 0x6f1   :  { %2792 = vlog2.f32 %v2058_v48 }
 0x6f2   :  { %v2115_v15 = vsub.f32 %v3576_v46, %v2088_v61 }
 0x6f4   :  { %2131 = vst [vmem:[#allocation16 + $0x20] sm:$0xff] %v2115_v15 }
 0x6f7   :  { %v2793_v6 = vpop.eup %2792 }
 0x6f8   :  { %v2090_v47 = vmul.f32 0.6931472, %v2793_v6  ;;  %v2060_v50 = vpop.xlane.xlu2 %2059 }
 0x6f9   :  { %2794 = vlog2.f32 %v2060_v50 }
 0x6fa   :  { %v2116_v57 = vsub.f32 %v3580_v9, %v2090_v47 }
 0x6fc   :  { %2132 = vst [vmem:[#allocation16 + $0x28] sm:$0xff] %v2116_v57 }
 0x6ff   :  { %v2795_v49 = vpop.eup %2794 }
 0x700   :  { %v2092_v63 = vmul.f32 0.6931472, %v2795_v49  ;;  %v2062_v3 = vpop.xlane.xlu0 %2061 }
 0x701   :  { %2796 = vlog2.f32 %v2062_v3 }
 0x702   :  { %v2117_v37 = vsub.f32 %v3584_v30, %v2092_v63 }
 0x704   :  { %2133 = vst [vmem:[#allocation16 + $0x30] sm:$0xff] %v2117_v37 }
 0x707   :  { %v2797_v45 = vpop.eup %2796 }
 0x708   :  { %v2094_v56 = vmul.f32 0.6931472, %v2797_v45  ;;  %v2064_v13 = vpop.xlane.xlu1 %2063 }
 0x709   :  { %2798 = vlog2.f32 %v2064_v13 }
 0x70a   :  { %v2118_v46 = vsub.f32 %v3588_v23, %v2094_v56 }
 0x70c   :  { %2134 = vst [vmem:[#allocation16 + $0x38] sm:$0xff] %v2118_v46 }
 0x70f   :  { %v2799_v53 = vpop.eup %2798 }
 0x710   :  { %v2096_v32 = vmul.f32 0.6931472, %v2799_v53  ;;  %v2066_v55 = vpop.xlane.xlu2 %2065 }
 0x711   :  { %2800 = vlog2.f32 %v2066_v55 }
 0x712   :  { %v2119_v9 = vsub.f32 %v3592_v4, %v2096_v32 }
 0x714   :  { %2135 = vst [vmem:[#allocation16 + $0x40] sm:$0xff] %v2119_v9 }
 0x717   :  { %v2801_v18 = vpop.eup %2800 }
 0x718   :  { %v2098_v21 = vmul.f32 0.6931472, %v2801_v18  ;;  %v2068_v27 = vpop.xlane.xlu0 %2067 }
 0x719   :  { %2802 = vlog2.f32 %v2068_v27 }
 0x71a   :  { %v2120_v30 = vsub.f32 %v3596_v52, %v2098_v21 }
 0x71c   :  { %2136 = vst [vmem:[#allocation16 + $0x48] sm:$0xff] %v2120_v30 }
 0x71f   :  { %v2803_v59 = vpop.eup %2802 }
 0x720   :  { %v2100_v35 = vmul.f32 0.6931472, %v2803_v59  ;;  %v2070_v10 = vpop.xlane.xlu1 %2069 }
 0x721   :  { %2804 = vlog2.f32 %v2070_v10 }
 0x722   :  { %v2121_v23 = vsub.f32 %v3600_v28, %v2100_v35 }
 0x724   :  { %2137 = vst [vmem:[#allocation16 + $0x50] sm:$0xff] %v2121_v23 }
 0x727   :  { %v2805_v42 = vpop.eup %2804 }
 0x728   :  { %v2102_v39 = vmul.f32 0.6931472, %v2805_v42  ;;  %v2072_v1 = vpop.xlane.xlu2 %2071 }
 0x729   :  { %2806 = vlog2.f32 %v2072_v1 }
 0x72a   :  { %v2122_v4 = vsub.f32 %v3604_v7, %v2102_v39 }
 0x72c   :  { %2138 = vst [vmem:[#allocation16 + $0x58] sm:$0xff] %v2122_v4 }
 0x72f   :  { %v2807_v5 = vpop.eup %2806 }
 0x730   :  { %v2104_v33 = vmul.f32 0.6931472, %v2807_v5  ;;  %v2074_v16 = vpop.xlane.xlu0 %2073 }
 0x731   :  { %2808 = vlog2.f32 %v2074_v16 }
 0x732   :  { %v2123_v52 = vsub.f32 %v3608_v29, %v2104_v33 }
 0x734   :  { %2139 = vst [vmem:[#allocation16 + $0x60] sm:$0xff] %v2123_v52 }
 0x737   :  { %v2809_v31 = vpop.eup %2808 }
 0x738   :  { %v2106_v11 = vmul.f32 0.6931472, %v2809_v31  ;;  %v2076_v12 = vpop.xlane.xlu1 %2075 }
 0x739   :  { %2810 = vlog2.f32 %v2076_v12 }
 0x73a   :  { %v2124_v28 = vsub.f32 %v3612_v2, %v2106_v11 }
 0x73c   :  { %2140 = vst [vmem:[#allocation16 + $0x68] sm:$0xff] %v2124_v28 }
 0x73f   :  { %v2811_v58 = vpop.eup %2810 }
 0x740   :  { %v2108_v14 = vmul.f32 0.6931472, %v2811_v58  ;;  %v2078_v34 = vpop.xlane.xlu2 %2077 }
 0x741   :  { %2812 = vlog2.f32 %v2078_v34 }
 0x742   :  { %v2125_v7 = vsub.f32 %v3616_v0, %v2108_v14 }
 0x744   :  { %2141 = vst [vmem:[#allocation16 + $0x70] sm:$0xff] %v2125_v7 }
 0x747   :  { %v2813_v19 = vpop.eup %2812 }
 0x748   :  { %v2110_v29 = vmul.f32 0.6931472, %v2813_v19 }
 0x74a   :  { %v2126_v17 = vsub.f32 %v3620_v38, %v2110_v29 }
 0x74c   :  { %2142 = vst [vmem:[#allocation16 + $0x78] sm:$0xff] %v2126_v17 }
 0x74d   :  { %2155 = dma.vmem_to_hbm [thread:$0]  %s2148_s27, 2048, %s2150_s6, [#allocation9], %s3019_s21, %s3019_s21, %s3020_s22  }
 0x74e   :  { %3016 = dma.done.wait [#allocation9], 2048  }
 0x74f   :  { %3017 = vsyncadd [#allocation9], 4294965248 }
 0x750   :  { %2160 = vsyncpa [#allocation8], 1 }
 0x751   :  { %2161 = vsyncpa [#allocation11], 1 }
 0x752   :  { %2162 = vsyncpa [#allocation14], 1 }
 0x753   :  { %2163 = vsyncpa [#allocation9], 1 }
 0x754   :  { %2164 = vsyncmov [#allocation3] }
 0x757   :  { %s2165_s30 = vpop.sfrf %2164 }
 0x758   :  { %p2497_p0 = scmp.ne.s32.totalorder %s2165_s30, 0 }
 0x75a   :  { %2169 = shalt.err (%p2497_p0)  }
 0x75b   :  { %2171 = vsyncmov [#allocation3 + $0x1] }
 0x75e   :  { %s2172_s10 = vpop.sfrf %2171 }
 0x75f   :  { %p2498_p1 = scmp.ne.s32.totalorder %s2172_s10, 0 }
 0x761   :  { %2176 = shalt.err (%p2498_p1)  }

</bundles_post_ra>
